<compile_context>
chip_gen: v6e
topology: v6e:2x2x1
jax: 0.10.0
libtpu: 0.0.40
codegen_flags: <defaults>
</compile_context>

<pallas_src>
import functools

import jax
import jax.numpy as jnp
from jax import lax
from jax.experimental import pallas as pl
from jax.experimental.pallas import tpu as pltpu


# ------------------------------ small helpers -------------------------------
def _round_up(x, m):
    return (x + m - 1) // m * m


def _pad_axis(a, axis, new_size):
    pad = new_size - a.shape[axis]
    if pad == 0:
        return a
    widths = [(0, 0)] * a.ndim
    widths[axis] = (0, pad)
    return jnp.pad(a, widths)


def _pad_gates(w, hidden, hidden_pad):
    """Pad the trailing 4*hidden axis gate-by-gate to 4*hidden_pad."""
    lead = w.shape[:-1]
    w4 = w.reshape(lead + (4, hidden))
    w4 = _pad_axis(w4, w4.ndim - 1, hidden_pad)
    return w4.reshape(lead + (4 * hidden_pad,))


# ----------------------------- Pallas kernel --------------------------------
def lstm_fc_kernel(x_ref, w_ih_ref, w_hh_ref, b_ref, w_fc_ref, b_fc_ref,
                   out_ref, h_sc, c_sc, gx_sc, *, t_tile, seq_len, hidden_pad):
    """One grid step == T_TILE timesteps of the LSTM recurrence for one batch block.

    x_ref:    (1, T_TILE*B_TILE, E) bf16  rows ordered (timestep, batch)
    w_ih_ref: (E, 4*Hp)             bf16  input->gates (padded per gate)
    w_hh_ref: (Hp, 4*Hp)            bf16  hidden->gates (padded per gate)
    b_ref:    (1, 4*Hp)             f32   b_ih + b_hh (padded per gate)
    w_fc_ref: (Hp, Op)              bf16  final linear weights
    b_fc_ref: (1, Op)               f32   final linear bias
    out_ref:  (B_TILE, Op)          f32   logits (written on last time block)
    h_sc/c_sc:(B_TILE, Hp)          f32   recurrent state carried across grid steps
    gx_sc:    (T_TILE*B_TILE, 4*Hp) f32   precomputed input projection for this block
    """
    ti = pl.program_id(1)
    b_tile = h_sc.shape[0]
    hp = hidden_pad

    @pl.when(ti == 0)
    def _():
        h_sc[...] = jnp.zeros_like(h_sc)
        c_sc[...] = jnp.zeros_like(c_sc)

    # --- hoisted input projection: ONE MXU matmul for all T_TILE timesteps,
    #     bias folded in once per block (not per step). ------------------------
    x_blk = x_ref[0]                                         # (T*B, E) bf16
    gx = jnp.dot(x_blk, w_ih_ref[...], preferred_element_type=jnp.float32)
    gx_sc[...] = gx + b_ref[...]                             # (T*B, 4Hp) f32

    w_hh = w_hh_ref[...]                                     # resident bf16 weights
    h = h_sc[...]                                            # (B, Hp) f32
    c = c_sc[...]

    # --- serial recurrence, fully unrolled over the time tile -----------------
    for t in range(t_tile):
        g_x = gx_sc[t * b_tile:(t + 1) * b_tile, :]          # (B, 4Hp) f32
        gates = g_x + jnp.dot(h.astype(jnp.bfloat16), w_hh,
                              preferred_element_type=jnp.float32)
        # PyTorch gate order: i, f, g, o — each slice is a full 128-lane tile.
        i_g = jax.nn.sigmoid(gates[:, 0 * hp:1 * hp])
        f_g = jax.nn.sigmoid(gates[:, 1 * hp:2 * hp])
        g_g = jnp.tanh(gates[:, 2 * hp:3 * hp])
        o_g = jax.nn.sigmoid(gates[:, 3 * hp:4 * hp])
        c_new = f_g * c + i_g * g_g
        h_new = o_g * jnp.tanh(c_new)
        if seq_len % t_tile != 0:
            # Masked tail: keep state unchanged for padded timesteps.
            valid = (ti * t_tile + t) < seq_len
            h_new = jnp.where(valid, h_new, h)
            c_new = jnp.where(valid, c_new, c)
        h, c = h_new, c_new

    h_sc[...] = h
    c_sc[...] = c

    @pl.when(ti == pl.num_programs(1) - 1)
    def _():
        logits = (jnp.dot(h.astype(jnp.bfloat16), w_fc_ref[...],
                          preferred_element_type=jnp.float32) + b_fc_ref[...])
        out_ref[...] = logits.astype(out_ref.dtype)          # lane-dense store


# ------------------------------- wrapper -------------------------------------
def lstm_forward(text, params, *, t_tile=8):
    """Embedding lookup (XLA glue) + Pallas LSTM+FC kernel."""
    emb_table = params["embedding"]          # (V, E)
    w_ih, w_hh, b = params["w_ih"], params["w_hh"], params["b"]
    w_fc, b_fc = params["w_fc"], params["b_fc"]

    seq_len, batch = text.shape
    emb_dim = emb_table.shape[1]
    hidden = w_hh.shape[0]
    out_dim = w_fc.shape[1]

    # ---- native-tile padding (8 sublanes x 128 lanes) --------------------------
    b_pad = _round_up(batch, 8)
    h_pad = _round_up(hidden, 128)
    o_pad = _round_up(out_dim, 128)
    s_pad = _round_up(seq_len, t_tile)
    n_t = s_pad // t_tile

    # Parallel batch axis (shards across TensorCores on v7x; no-op on 1-TC chips).
    if b_pad >= 16 and b_pad % 16 == 0:
        n_b, b_tile = 2, b_pad // 2
    else:
        n_b, b_tile = 1, b_pad

    # ---- glue: embedding gather + one-off layout/padding (plain XLA) -----------
    embedded = jnp.take(emb_table, text, axis=0)             # (S, B, E) f32
    embedded = _pad_axis(_pad_axis(embedded, 0, s_pad), 1, b_pad)
    # (S_pad, B_pad, E) -> (n_b, S_pad*b_tile, E) with rows ordered (t, b) inside
    # each batch block, so the kernel needs no in-kernel reshape.
    x = embedded.reshape(s_pad, n_b, b_tile, emb_dim).transpose(1, 0, 2, 3)
    x = x.reshape(n_b, s_pad * b_tile, emb_dim).astype(jnp.bfloat16)

    w_ih_p = _pad_gates(w_ih, hidden, h_pad).astype(jnp.bfloat16)              # (E, 4Hp)
    w_hh_p = _pad_gates(_pad_axis(w_hh, 0, h_pad),
                        hidden, h_pad).astype(jnp.bfloat16)                    # (Hp, 4Hp)
    b_p = _pad_gates(b, hidden, h_pad)                                         # (1, 4Hp) f32
    w_fc_p = _pad_axis(_pad_axis(w_fc, 0, h_pad), 1, o_pad).astype(jnp.bfloat16)  # (Hp, Op)
    b_fc_p = _pad_axis(b_fc, 1, o_pad)                                         # (1, Op) f32

    kernel = functools.partial(lstm_fc_kernel, t_tile=t_tile,
                               seq_len=seq_len, hidden_pad=h_pad)

    out = pl.pallas_call(
        kernel,
        out_shape=jax.ShapeDtypeStruct((b_pad, o_pad), jnp.float32),
        grid_spec=pltpu.PrefetchScalarGridSpec(
            num_scalar_prefetch=0,
            grid=(n_b, n_t),
            in_specs=[
                pl.BlockSpec((1, t_tile * b_tile, emb_dim),
                             lambda bi, ti: (bi, ti, 0)),
                # Constant-index weights: DMA'd once, resident in VMEM.
                # (For very large H on v7x: use bf16 + single-buffering /
                #  vmem_limit_bytes headroom.)
                pl.BlockSpec((emb_dim, 4 * h_pad), lambda bi, ti: (0, 0)),
                pl.BlockSpec((h_pad, 4 * h_pad), lambda bi, ti: (0, 0)),
                pl.BlockSpec((1, 4 * h_pad), lambda bi, ti: (0, 0)),
                pl.BlockSpec((h_pad, o_pad), lambda bi, ti: (0, 0)),
                pl.BlockSpec((1, o_pad), lambda bi, ti: (0, 0)),
            ],
            out_specs=pl.BlockSpec((b_tile, o_pad), lambda bi, ti: (bi, 0)),
            scratch_shapes=[
                pltpu.VMEM((b_tile, h_pad), jnp.float32),              # h state
                pltpu.VMEM((b_tile, h_pad), jnp.float32),              # c state
                pltpu.VMEM((t_tile * b_tile, 4 * h_pad), jnp.float32), # x-proj gates
            ],
        ),
        compiler_params=pltpu.CompilerParams(
            dimension_semantics=("parallel", "arbitrary"),  # batch ∥, time serial
        ),
    )(x, w_ih_p, w_hh_p, b_p, w_fc_p, b_fc_p)

    return out[:batch, :out_dim]


# --------------------------- pure-JAX reference ------------------------------
def lstm_forward_ref(text, params):
    """Reference with matched matmul precision (bf16 operands, f32 accumulate)."""
    emb = jnp.take(params["embedding"], text, axis=0)        # (S, B, E)
    hidden = params["w_hh"].shape[0]
    batch = text.shape[1]
    w_ih = params["w_ih"].astype(jnp.bfloat16)
    w_hh = params["w_hh"].astype(jnp.bfloat16)
    w_fc = params["w_fc"].astype(jnp.bfloat16)
    bias = params["b"][0]

    def step(carry, x_t):
        h, c = carry
        gates = (jnp.dot(x_t.astype(jnp.bfloat16), w_ih,
                         preferred_element_type=jnp.float32)
                 + jnp.dot(h.astype(jnp.bfloat16), w_hh,
                           preferred_element_type=jnp.float32)
                 + bias)
        i_g = jax.nn.sigmoid(gates[:, 0 * hidden:1 * hidden])
        f_g = jax.nn.sigmoid(gates[:, 1 * hidden:2 * hidden])
        g_g = jnp.tanh(gates[:, 2 * hidden:3 * hidden])
        o_g = jax.nn.sigmoid(gates[:, 3 * hidden:4 * hidden])
        c_new = f_g * c + i_g * g_g
        h_new = o_g * jnp.tanh(c_new)
        return (h_new, c_new), None

    init = (jnp.zeros((batch, hidden), jnp.float32),
            jnp.zeros((batch, hidden), jnp.float32))
    (h_T, _), _ = lax.scan(step, init, emb)
    return (jnp.dot(h_T.astype(jnp.bfloat16), w_fc,
                    preferred_element_type=jnp.float32) + params["b_fc"][0])


# ------------------------------ parameter init -------------------------------
def init_params(key, vocab, emb_dim, hidden_dim, out_dim):
    ks = jax.random.split(key, 7)
    bound = 1.0 / jnp.sqrt(hidden_dim)
    return {
        # nn.Embedding: N(0, 1)
        "embedding": jax.random.normal(ks[0], (vocab, emb_dim), jnp.float32),
        # nn.LSTM weights: U(-1/sqrt(H), 1/sqrt(H)); stored pre-transposed
        "w_ih": jax.random.uniform(ks[1], (emb_dim, 4 * hidden_dim),
                                   jnp.float32, -bound, bound),
        "w_hh": jax.random.uniform(ks[2], (hidden_dim, 4 * hidden_dim),
                                   jnp.float32, -bound, bound),
        # b = b_ih + b_hh combined
        "b": (jax.random.uniform(ks[3], (1, 4 * hidden_dim), jnp.float32,
                                 -bound, bound)
              + jax.random.uniform(ks[4], (1, 4 * hidden_dim), jnp.float32,
                                   -bound, bound)),
        # nn.Linear(hidden_dim, out_dim)
        "w_fc": jax.random.uniform(ks[5], (hidden_dim, out_dim),
                                   jnp.float32, -bound, bound),
        "b_fc": jax.random.uniform(ks[6], (1, out_dim),
                                   jnp.float32, -bound, bound),
    }


# ----------------------------------- main ------------------------------------
if __name__ == "__main__":
    VOCAB, EMB, HIDDEN, OUT = 100, 32, 32, 4
    SEQ, BATCH = 8, 4

    key = jax.random.PRNGKey(0)
    k_text, k_params = jax.random.split(key)

    params = init_params(k_params, VOCAB, EMB, HIDDEN, OUT)
    text = jax.random.randint(k_text, (SEQ, BATCH), 0, VOCAB, dtype=jnp.int32)

    out = jax.block_until_ready(lstm_forward(text, params))
    ref = jax.block_until_ready(lstm_forward_ref(text, params))

    assert out.shape == (BATCH, OUT)
    assert jnp.allclose(out, ref, atol=2e-3, rtol=2e-3), \
        f"mismatch: max abs diff {jnp.max(jnp.abs(out - ref))}"

    print("KERNEL_OK")
</pallas_src>

<mosaic_0001>
module attributes {stable_mosaic.version = 11 : i64} {
  func.func @lstm_fc_kernel(%arg0: i32, %arg1: i32, %arg2: memref<1x64x32xbf16, #tpu.memory_space<vmem>>, %arg3: memref<32x512xbf16, #tpu.memory_space<vmem>>, %arg4: memref<128x512xbf16, #tpu.memory_space<vmem>>, %arg5: memref<1x512xf32, #tpu.memory_space<vmem>>, %arg6: memref<128x128xbf16, #tpu.memory_space<vmem>>, %arg7: memref<1x128xf32, #tpu.memory_space<vmem>>, %arg8: memref<8x128xf32, #tpu.memory_space<vmem>>, %arg9: memref<8x128xf32, #tpu.memory_space<vmem>>, %arg10: memref<8x128xf32, #tpu.memory_space<vmem>>, %arg11: memref<64x512xf32, #tpu.memory_space<vmem>>) attributes {dimension_semantics = [#tpu.dimension_semantics<parallel>, #tpu.dimension_semantics<arbitrary>], iteration_bounds = array<i64: 1, 1>, scalar_prefetch = 0 : i64, scratch_operands = 3 : i64, tpu.core_type = #tpu.core_type<tc>, window_params = [{transform_indices = @transform_0, window_bounds = array<i64: 1, 64, 32>}, {pipeline_mode = #tpu.pipeline_mode<synchronous>, transform_indices = @transform_1, window_bounds = array<i64: 32, 512>}, {pipeline_mode = #tpu.pipeline_mode<synchronous>, transform_indices = @transform_2, window_bounds = array<i64: 128, 512>}, {pipeline_mode = #tpu.pipeline_mode<synchronous>, transform_indices = @transform_3, window_bounds = array<i64: 1, 512>}, {pipeline_mode = #tpu.pipeline_mode<synchronous>, transform_indices = @transform_4, window_bounds = array<i64: 128, 128>}, {pipeline_mode = #tpu.pipeline_mode<synchronous>, transform_indices = @transform_5, window_bounds = array<i64: 1, 128>}, {transform_indices = @transform_6, window_bounds = array<i64: 8, 128>}]} {
    %c0_i32 = arith.constant 0 : i32
    %0 = arith.cmpi eq, %arg1, %c0_i32 : i32
    %1 = arith.extui %0 : i1 to i32
    %c0_i32_0 = arith.constant 0 : i32
    %2 = arith.cmpi ne, %1, %c0_i32_0 : i32
    scf.if %2 {
      %cst_62 = arith.constant 0.000000e+00 : f32
      %251 = vector.broadcast %cst_62 : f32 to vector<8x128xf32>
      %c0_63 = arith.constant 0 : index
      %c0_64 = arith.constant 0 : index
      %252 = vector.load %arg9[%c0_63, %c0_64] : memref<8x128xf32, #tpu.memory_space<vmem>>, vector<8x128xf32>
      tpu.vector_store %arg9[%c0_63, %c0_64], %251 {strides = array<i32>} : memref<8x128xf32, #tpu.memory_space<vmem>>, vector<8x128xf32>,
      %cst_65 = arith.constant 0.000000e+00 : f32
      %253 = vector.broadcast %cst_65 : f32 to vector<8x128xf32>
      %c0_66 = arith.constant 0 : index
      %c0_67 = arith.constant 0 : index
      %254 = vector.load %arg10[%c0_66, %c0_67] : memref<8x128xf32, #tpu.memory_space<vmem>>, vector<8x128xf32>
      tpu.vector_store %arg10[%c0_66, %c0_67], %253 {strides = array<i32>} : memref<8x128xf32, #tpu.memory_space<vmem>>, vector<8x128xf32>,
    } else {
    }
    %c0 = arith.constant 0 : index
    %c0_1 = arith.constant 0 : index
    %c0_2 = arith.constant 0 : index
    %3 = vector.load %arg2[%c0, %c0_1, %c0_2] : memref<1x64x32xbf16, #tpu.memory_space<vmem>>, vector<1x64x32xbf16>
    %4 = vector.shape_cast %3 : vector<1x64x32xbf16> to vector<64x32xbf16>
    %c0_3 = arith.constant 0 : index
    %c0_4 = arith.constant 0 : index
    %5 = vector.load %arg3[%c0_3, %c0_4] : memref<32x512xbf16, #tpu.memory_space<vmem>>, vector<32x512xbf16>
    %cst = arith.constant dense<0.000000e+00> : vector<64x512xf32>
    %6 = tpu.matmul %4, %5, %cst {dimension_numbers = #tpu.dot_dimension_numbers<[1], [0], [0], [1], [0, 0, 1, 1], [], []>} : vector<64x32xbf16>, vector<32x512xbf16>, vector<64x512xf32> -> vector<64x512xf32>
    %c0_5 = arith.constant 0 : index
    %c0_6 = arith.constant 0 : index
    %7 = vector.load %arg5[%c0_5, %c0_6] : memref<1x512xf32, #tpu.memory_space<vmem>>, vector<1x512xf32>
    %8 = vector.broadcast %7 : vector<1x512xf32> to vector<64x512xf32>
    %9 = arith.addf %6, %8 : vector<64x512xf32>
    %c0_7 = arith.constant 0 : index
    %c0_8 = arith.constant 0 : index
    %10 = vector.load %arg11[%c0_7, %c0_8] : memref<64x512xf32, #tpu.memory_space<vmem>>, vector<64x512xf32>
    tpu.vector_store %arg11[%c0_7, %c0_8], %9 {strides = array<i32>} : memref<64x512xf32, #tpu.memory_space<vmem>>, vector<64x512xf32>,
    %c0_9 = arith.constant 0 : index
    %c0_10 = arith.constant 0 : index
    %11 = vector.load %arg4[%c0_9, %c0_10] : memref<128x512xbf16, #tpu.memory_space<vmem>>, vector<128x512xbf16>
    %c0_11 = arith.constant 0 : index
    %c0_12 = arith.constant 0 : index
    %12 = vector.load %arg9[%c0_11, %c0_12] : memref<8x128xf32, #tpu.memory_space<vmem>>, vector<8x128xf32>
    %c0_13 = arith.constant 0 : index
    %c0_14 = arith.constant 0 : index
    %13 = vector.load %arg10[%c0_13, %c0_14] : memref<8x128xf32, #tpu.memory_space<vmem>>, vector<8x128xf32>
    %c0_15 = arith.constant 0 : index
    %c0_16 = arith.constant 0 : index
    %14 = vector.load %arg11[%c0_15, %c0_16] : memref<64x512xf32, #tpu.memory_space<vmem>>, vector<8x512xf32>
    %15 = arith.truncf %12 : vector<8x128xf32> to vector<8x128xbf16>
    %cst_17 = arith.constant dense<0.000000e+00> : vector<8x512xf32>
    %16 = tpu.matmul %15, %11, %cst_17 {dimension_numbers = #tpu.dot_dimension_numbers<[1], [0], [0], [1], [0, 0, 1, 1], [], []>} : vector<8x128xbf16>, vector<128x512xbf16>, vector<8x512xf32> -> vector<8x512xf32>
    %17 = arith.addf %14, %16 : vector<8x512xf32>
    %18 = vector.extract_strided_slice %17 {offsets = [0, 0], sizes = [8, 128], strides = [1, 1]} : vector<8x512xf32> to vector<8x128xf32>
    %19 = arith.negf %18 : vector<8x128xf32>
    %20 = math.exp %19 : vector<8x128xf32>
    %cst_18 = arith.constant 1.000000e+00 : f32
    %21 = vector.broadcast %cst_18 : f32 to vector<8x128xf32>
    %22 = arith.addf %21, %20 : vector<8x128xf32>
    %23 = arith.divf %21, %22 : vector<8x128xf32>
    %24 = vector.extract_strided_slice %17 {offsets = [0, 128], sizes = [8, 128], strides = [1, 1]} : vector<8x512xf32> to vector<8x128xf32>
    %25 = arith.negf %24 : vector<8x128xf32>
    %26 = math.exp %25 : vector<8x128xf32>
    %cst_19 = arith.constant 1.000000e+00 : f32
    %27 = vector.broadcast %cst_19 : f32 to vector<8x128xf32>
    %28 = arith.addf %27, %26 : vector<8x128xf32>
    %29 = arith.divf %27, %28 : vector<8x128xf32>
    %30 = vector.extract_strided_slice %17 {offsets = [0, 256], sizes = [8, 128], strides = [1, 1]} : vector<8x512xf32> to vector<8x128xf32>
    %31 = math.tanh %30 : vector<8x128xf32>
    %32 = vector.extract_strided_slice %17 {offsets = [0, 384], sizes = [8, 128], strides = [1, 1]} : vector<8x512xf32> to vector<8x128xf32>
    %33 = arith.negf %32 : vector<8x128xf32>
    %34 = math.exp %33 : vector<8x128xf32>
    %cst_20 = arith.constant 1.000000e+00 : f32
    %35 = vector.broadcast %cst_20 : f32 to vector<8x128xf32>
    %36 = arith.addf %35, %34 : vector<8x128xf32>
    %37 = arith.divf %35, %36 : vector<8x128xf32>
    %38 = arith.mulf %29, %13 : vector<8x128xf32>
    %39 = arith.mulf %23, %31 : vector<8x128xf32>
    %40 = arith.addf %38, %39 : vector<8x128xf32>
    %41 = math.tanh %40 : vector<8x128xf32>
    %42 = arith.mulf %37, %41 : vector<8x128xf32>
    %c8 = arith.constant 8 : index
    %c0_21 = arith.constant 0 : index
    %43 = vector.load %arg11[%c8, %c0_21] : memref<64x512xf32, #tpu.memory_space<vmem>>, vector<8x512xf32>
    %44 = arith.truncf %42 : vector<8x128xf32> to vector<8x128xbf16>
    %cst_22 = arith.constant dense<0.000000e+00> : vector<8x512xf32>
    %45 = tpu.matmul %44, %11, %cst_22 {dimension_numbers = #tpu.dot_dimension_numbers<[1], [0], [0], [1], [0, 0, 1, 1], [], []>} : vector<8x128xbf16>, vector<128x512xbf16>, vector<8x512xf32> -> vector<8x512xf32>
    %46 = arith.addf %43, %45 : vector<8x512xf32>
    %47 = vector.extract_strided_slice %46 {offsets = [0, 0], sizes = [8, 128], strides = [1, 1]} : vector<8x512xf32> to vector<8x128xf32>
    %48 = arith.negf %47 : vector<8x128xf32>
    %49 = math.exp %48 : vector<8x128xf32>
    %cst_23 = arith.constant 1.000000e+00 : f32
    %50 = vector.broadcast %cst_23 : f32 to vector<8x128xf32>
    %51 = arith.addf %50, %49 : vector<8x128xf32>
    %52 = arith.divf %50, %51 : vector<8x128xf32>
    %53 = vector.extract_strided_slice %46 {offsets = [0, 128], sizes = [8, 128], strides = [1, 1]} : vector<8x512xf32> to vector<8x128xf32>
    %54 = arith.negf %53 : vector<8x128xf32>
    %55 = math.exp %54 : vector<8x128xf32>
    %cst_24 = arith.constant 1.000000e+00 : f32
    %56 = vector.broadcast %cst_24 : f32 to vector<8x128xf32>
    %57 = arith.addf %56, %55 : vector<8x128xf32>
    %58 = arith.divf %56, %57 : vector<8x128xf32>
    %59 = vector.extract_strided_slice %46 {offsets = [0, 256], sizes = [8, 128], strides = [1, 1]} : vector<8x512xf32> to vector<8x128xf32>
    %60 = math.tanh %59 : vector<8x128xf32>
    %61 = vector.extract_strided_slice %46 {offsets = [0, 384], sizes = [8, 128], strides = [1, 1]} : vector<8x512xf32> to vector<8x128xf32>
    %62 = arith.negf %61 : vector<8x128xf32>
    %63 = math.exp %62 : vector<8x128xf32>
    %cst_25 = arith.constant 1.000000e+00 : f32
    %64 = vector.broadcast %cst_25 : f32 to vector<8x128xf32>
    %65 = arith.addf %64, %63 : vector<8x128xf32>
    %66 = arith.divf %64, %65 : vector<8x128xf32>
    %67 = arith.mulf %58, %40 : vector<8x128xf32>
    %68 = arith.mulf %52, %60 : vector<8x128xf32>
    %69 = arith.addf %67, %68 : vector<8x128xf32>
    %70 = math.tanh %69 : vector<8x128xf32>
    %71 = arith.mulf %66, %70 : vector<8x128xf32>
    %c16 = arith.constant 16 : index
    %c0_26 = arith.constant 0 : index
    %72 = vector.load %arg11[%c16, %c0_26] : memref<64x512xf32, #tpu.memory_space<vmem>>, vector<8x512xf32>
    %73 = arith.truncf %71 : vector<8x128xf32> to vector<8x128xbf16>
    %cst_27 = arith.constant dense<0.000000e+00> : vector<8x512xf32>
    %74 = tpu.matmul %73, %11, %cst_27 {dimension_numbers = #tpu.dot_dimension_numbers<[1], [0], [0], [1], [0, 0, 1, 1], [], []>} : vector<8x128xbf16>, vector<128x512xbf16>, vector<8x512xf32> -> vector<8x512xf32>
    %75 = arith.addf %72, %74 : vector<8x512xf32>
    %76 = vector.extract_strided_slice %75 {offsets = [0, 0], sizes = [8, 128], strides = [1, 1]} : vector<8x512xf32> to vector<8x128xf32>
    %77 = arith.negf %76 : vector<8x128xf32>
    %78 = math.exp %77 : vector<8x128xf32>
    %cst_28 = arith.constant 1.000000e+00 : f32
    %79 = vector.broadcast %cst_28 : f32 to vector<8x128xf32>
    %80 = arith.addf %79, %78 : vector<8x128xf32>
    %81 = arith.divf %79, %80 : vector<8x128xf32>
    %82 = vector.extract_strided_slice %75 {offsets = [0, 128], sizes = [8, 128], strides = [1, 1]} : vector<8x512xf32> to vector<8x128xf32>
    %83 = arith.negf %82 : vector<8x128xf32>
    %84 = math.exp %83 : vector<8x128xf32>
    %cst_29 = arith.constant 1.000000e+00 : f32
    %85 = vector.broadcast %cst_29 : f32 to vector<8x128xf32>
    %86 = arith.addf %85, %84 : vector<8x128xf32>
    %87 = arith.divf %85, %86 : vector<8x128xf32>
    %88 = vector.extract_strided_slice %75 {offsets = [0, 256], sizes = [8, 128], strides = [1, 1]} : vector<8x512xf32> to vector<8x128xf32>
    %89 = math.tanh %88 : vector<8x128xf32>
    %90 = vector.extract_strided_slice %75 {offsets = [0, 384], sizes = [8, 128], strides = [1, 1]} : vector<8x512xf32> to vector<8x128xf32>
    %91 = arith.negf %90 : vector<8x128xf32>
    %92 = math.exp %91 : vector<8x128xf32>
    %cst_30 = arith.constant 1.000000e+00 : f32
    %93 = vector.broadcast %cst_30 : f32 to vector<8x128xf32>
    %94 = arith.addf %93, %92 : vector<8x128xf32>
    %95 = arith.divf %93, %94 : vector<8x128xf32>
    %96 = arith.mulf %87, %69 : vector<8x128xf32>
    %97 = arith.mulf %81, %89 : vector<8x128xf32>
    %98 = arith.addf %96, %97 : vector<8x128xf32>
    %99 = math.tanh %98 : vector<8x128xf32>
    %100 = arith.mulf %95, %99 : vector<8x128xf32>
    %c24 = arith.constant 24 : index
    %c0_31 = arith.constant 0 : index
    %101 = vector.load %arg11[%c24, %c0_31] : memref<64x512xf32, #tpu.memory_space<vmem>>, vector<8x512xf32>
    %102 = arith.truncf %100 : vector<8x128xf32> to vector<8x128xbf16>
    %cst_32 = arith.constant dense<0.000000e+00> : vector<8x512xf32>
    %103 = tpu.matmul %102, %11, %cst_32 {dimension_numbers = #tpu.dot_dimension_numbers<[1], [0], [0], [1], [0, 0, 1, 1], [], []>} : vector<8x128xbf16>, vector<128x512xbf16>, vector<8x512xf32> -> vector<8x512xf32>
    %104 = arith.addf %101, %103 : vector<8x512xf32>
    %105 = vector.extract_strided_slice %104 {offsets = [0, 0], sizes = [8, 128], strides = [1, 1]} : vector<8x512xf32> to vector<8x128xf32>
    %106 = arith.negf %105 : vector<8x128xf32>
    %107 = math.exp %106 : vector<8x128xf32>
    %cst_33 = arith.constant 1.000000e+00 : f32
    %108 = vector.broadcast %cst_33 : f32 to vector<8x128xf32>
    %109 = arith.addf %108, %107 : vector<8x128xf32>
    %110 = arith.divf %108, %109 : vector<8x128xf32>
    %111 = vector.extract_strided_slice %104 {offsets = [0, 128], sizes = [8, 128], strides = [1, 1]} : vector<8x512xf32> to vector<8x128xf32>
    %112 = arith.negf %111 : vector<8x128xf32>
    %113 = math.exp %112 : vector<8x128xf32>
    %cst_34 = arith.constant 1.000000e+00 : f32
    %114 = vector.broadcast %cst_34 : f32 to vector<8x128xf32>
    %115 = arith.addf %114, %113 : vector<8x128xf32>
    %116 = arith.divf %114, %115 : vector<8x128xf32>
    %117 = vector.extract_strided_slice %104 {offsets = [0, 256], sizes = [8, 128], strides = [1, 1]} : vector<8x512xf32> to vector<8x128xf32>
    %118 = math.tanh %117 : vector<8x128xf32>
    %119 = vector.extract_strided_slice %104 {offsets = [0, 384], sizes = [8, 128], strides = [1, 1]} : vector<8x512xf32> to vector<8x128xf32>
    %120 = arith.negf %119 : vector<8x128xf32>
    %121 = math.exp %120 : vector<8x128xf32>
    %cst_35 = arith.constant 1.000000e+00 : f32
    %122 = vector.broadcast %cst_35 : f32 to vector<8x128xf32>
    %123 = arith.addf %122, %121 : vector<8x128xf32>
    %124 = arith.divf %122, %123 : vector<8x128xf32>
    %125 = arith.mulf %116, %98 : vector<8x128xf32>
    %126 = arith.mulf %110, %118 : vector<8x128xf32>
    %127 = arith.addf %125, %126 : vector<8x128xf32>
    %128 = math.tanh %127 : vector<8x128xf32>
    %129 = arith.mulf %124, %128 : vector<8x128xf32>
    %c32 = arith.constant 32 : index
    %c0_36 = arith.constant 0 : index
    %130 = vector.load %arg11[%c32, %c0_36] : memref<64x512xf32, #tpu.memory_space<vmem>>, vector<8x512xf32>
    %131 = arith.truncf %129 : vector<8x128xf32> to vector<8x128xbf16>
    %cst_37 = arith.constant dense<0.000000e+00> : vector<8x512xf32>
    %132 = tpu.matmul %131, %11, %cst_37 {dimension_numbers = #tpu.dot_dimension_numbers<[1], [0], [0], [1], [0, 0, 1, 1], [], []>} : vector<8x128xbf16>, vector<128x512xbf16>, vector<8x512xf32> -> vector<8x512xf32>
    %133 = arith.addf %130, %132 : vector<8x512xf32>
    %134 = vector.extract_strided_slice %133 {offsets = [0, 0], sizes = [8, 128], strides = [1, 1]} : vector<8x512xf32> to vector<8x128xf32>
    %135 = arith.negf %134 : vector<8x128xf32>
    %136 = math.exp %135 : vector<8x128xf32>
    %cst_38 = arith.constant 1.000000e+00 : f32
    %137 = vector.broadcast %cst_38 : f32 to vector<8x128xf32>
    %138 = arith.addf %137, %136 : vector<8x128xf32>
    %139 = arith.divf %137, %138 : vector<8x128xf32>
    %140 = vector.extract_strided_slice %133 {offsets = [0, 128], sizes = [8, 128], strides = [1, 1]} : vector<8x512xf32> to vector<8x128xf32>
    %141 = arith.negf %140 : vector<8x128xf32>
    %142 = math.exp %141 : vector<8x128xf32>
    %cst_39 = arith.constant 1.000000e+00 : f32
    %143 = vector.broadcast %cst_39 : f32 to vector<8x128xf32>
    %144 = arith.addf %143, %142 : vector<8x128xf32>
    %145 = arith.divf %143, %144 : vector<8x128xf32>
    %146 = vector.extract_strided_slice %133 {offsets = [0, 256], sizes = [8, 128], strides = [1, 1]} : vector<8x512xf32> to vector<8x128xf32>
    %147 = math.tanh %146 : vector<8x128xf32>
    %148 = vector.extract_strided_slice %133 {offsets = [0, 384], sizes = [8, 128], strides = [1, 1]} : vector<8x512xf32> to vector<8x128xf32>
    %149 = arith.negf %148 : vector<8x128xf32>
    %150 = math.exp %149 : vector<8x128xf32>
    %cst_40 = arith.constant 1.000000e+00 : f32
    %151 = vector.broadcast %cst_40 : f32 to vector<8x128xf32>
    %152 = arith.addf %151, %150 : vector<8x128xf32>
    %153 = arith.divf %151, %152 : vector<8x128xf32>
    %154 = arith.mulf %145, %127 : vector<8x128xf32>
    %155 = arith.mulf %139, %147 : vector<8x128xf32>
    %156 = arith.addf %154, %155 : vector<8x128xf32>
    %157 = math.tanh %156 : vector<8x128xf32>
    %158 = arith.mulf %153, %157 : vector<8x128xf32>
    %c40 = arith.constant 40 : index
    %c0_41 = arith.constant 0 : index
    %159 = vector.load %arg11[%c40, %c0_41] : memref<64x512xf32, #tpu.memory_space<vmem>>, vector<8x512xf32>
    %160 = arith.truncf %158 : vector<8x128xf32> to vector<8x128xbf16>
    %cst_42 = arith.constant dense<0.000000e+00> : vector<8x512xf32>
    %161 = tpu.matmul %160, %11, %cst_42 {dimension_numbers = #tpu.dot_dimension_numbers<[1], [0], [0], [1], [0, 0, 1, 1], [], []>} : vector<8x128xbf16>, vector<128x512xbf16>, vector<8x512xf32> -> vector<8x512xf32>
    %162 = arith.addf %159, %161 : vector<8x512xf32>
    %163 = vector.extract_strided_slice %162 {offsets = [0, 0], sizes = [8, 128], strides = [1, 1]} : vector<8x512xf32> to vector<8x128xf32>
    %164 = arith.negf %163 : vector<8x128xf32>
    %165 = math.exp %164 : vector<8x128xf32>
    %cst_43 = arith.constant 1.000000e+00 : f32
    %166 = vector.broadcast %cst_43 : f32 to vector<8x128xf32>
    %167 = arith.addf %166, %165 : vector<8x128xf32>
    %168 = arith.divf %166, %167 : vector<8x128xf32>
    %169 = vector.extract_strided_slice %162 {offsets = [0, 128], sizes = [8, 128], strides = [1, 1]} : vector<8x512xf32> to vector<8x128xf32>
    %170 = arith.negf %169 : vector<8x128xf32>
    %171 = math.exp %170 : vector<8x128xf32>
    %cst_44 = arith.constant 1.000000e+00 : f32
    %172 = vector.broadcast %cst_44 : f32 to vector<8x128xf32>
    %173 = arith.addf %172, %171 : vector<8x128xf32>
    %174 = arith.divf %172, %173 : vector<8x128xf32>
    %175 = vector.extract_strided_slice %162 {offsets = [0, 256], sizes = [8, 128], strides = [1, 1]} : vector<8x512xf32> to vector<8x128xf32>
    %176 = math.tanh %175 : vector<8x128xf32>
    %177 = vector.extract_strided_slice %162 {offsets = [0, 384], sizes = [8, 128], strides = [1, 1]} : vector<8x512xf32> to vector<8x128xf32>
    %178 = arith.negf %177 : vector<8x128xf32>
    %179 = math.exp %178 : vector<8x128xf32>
    %cst_45 = arith.constant 1.000000e+00 : f32
    %180 = vector.broadcast %cst_45 : f32 to vector<8x128xf32>
    %181 = arith.addf %180, %179 : vector<8x128xf32>
    %182 = arith.divf %180, %181 : vector<8x128xf32>
    %183 = arith.mulf %174, %156 : vector<8x128xf32>
    %184 = arith.mulf %168, %176 : vector<8x128xf32>
    %185 = arith.addf %183, %184 : vector<8x128xf32>
    %186 = math.tanh %185 : vector<8x128xf32>
    %187 = arith.mulf %182, %186 : vector<8x128xf32>
    %c48 = arith.constant 48 : index
    %c0_46 = arith.constant 0 : index
    %188 = vector.load %arg11[%c48, %c0_46] : memref<64x512xf32, #tpu.memory_space<vmem>>, vector<8x512xf32>
    %189 = arith.truncf %187 : vector<8x128xf32> to vector<8x128xbf16>
    %cst_47 = arith.constant dense<0.000000e+00> : vector<8x512xf32>
    %190 = tpu.matmul %189, %11, %cst_47 {dimension_numbers = #tpu.dot_dimension_numbers<[1], [0], [0], [1], [0, 0, 1, 1], [], []>} : vector<8x128xbf16>, vector<128x512xbf16>, vector<8x512xf32> -> vector<8x512xf32>
    %191 = arith.addf %188, %190 : vector<8x512xf32>
    %192 = vector.extract_strided_slice %191 {offsets = [0, 0], sizes = [8, 128], strides = [1, 1]} : vector<8x512xf32> to vector<8x128xf32>
    %193 = arith.negf %192 : vector<8x128xf32>
    %194 = math.exp %193 : vector<8x128xf32>
    %cst_48 = arith.constant 1.000000e+00 : f32
    %195 = vector.broadcast %cst_48 : f32 to vector<8x128xf32>
    %196 = arith.addf %195, %194 : vector<8x128xf32>
    %197 = arith.divf %195, %196 : vector<8x128xf32>
    %198 = vector.extract_strided_slice %191 {offsets = [0, 128], sizes = [8, 128], strides = [1, 1]} : vector<8x512xf32> to vector<8x128xf32>
    %199 = arith.negf %198 : vector<8x128xf32>
    %200 = math.exp %199 : vector<8x128xf32>
    %cst_49 = arith.constant 1.000000e+00 : f32
    %201 = vector.broadcast %cst_49 : f32 to vector<8x128xf32>
    %202 = arith.addf %201, %200 : vector<8x128xf32>
    %203 = arith.divf %201, %202 : vector<8x128xf32>
    %204 = vector.extract_strided_slice %191 {offsets = [0, 256], sizes = [8, 128], strides = [1, 1]} : vector<8x512xf32> to vector<8x128xf32>
    %205 = math.tanh %204 : vector<8x128xf32>
    %206 = vector.extract_strided_slice %191 {offsets = [0, 384], sizes = [8, 128], strides = [1, 1]} : vector<8x512xf32> to vector<8x128xf32>
    %207 = arith.negf %206 : vector<8x128xf32>
    %208 = math.exp %207 : vector<8x128xf32>
    %cst_50 = arith.constant 1.000000e+00 : f32
    %209 = vector.broadcast %cst_50 : f32 to vector<8x128xf32>
    %210 = arith.addf %209, %208 : vector<8x128xf32>
    %211 = arith.divf %209, %210 : vector<8x128xf32>
    %212 = arith.mulf %203, %185 : vector<8x128xf32>
    %213 = arith.mulf %197, %205 : vector<8x128xf32>
    %214 = arith.addf %212, %213 : vector<8x128xf32>
    %215 = math.tanh %214 : vector<8x128xf32>
    %216 = arith.mulf %211, %215 : vector<8x128xf32>
    %c56 = arith.constant 56 : index
    %c0_51 = arith.constant 0 : index
    %217 = vector.load %arg11[%c56, %c0_51] : memref<64x512xf32, #tpu.memory_space<vmem>>, vector<8x512xf32>
    %218 = arith.truncf %216 : vector<8x128xf32> to vector<8x128xbf16>
    %cst_52 = arith.constant dense<0.000000e+00> : vector<8x512xf32>
    %219 = tpu.matmul %218, %11, %cst_52 {dimension_numbers = #tpu.dot_dimension_numbers<[1], [0], [0], [1], [0, 0, 1, 1], [], []>} : vector<8x128xbf16>, vector<128x512xbf16>, vector<8x512xf32> -> vector<8x512xf32>
    %220 = arith.addf %217, %219 : vector<8x512xf32>
    %221 = vector.extract_strided_slice %220 {offsets = [0, 0], sizes = [8, 128], strides = [1, 1]} : vector<8x512xf32> to vector<8x128xf32>
    %222 = arith.negf %221 : vector<8x128xf32>
    %223 = math.exp %222 : vector<8x128xf32>
    %cst_53 = arith.constant 1.000000e+00 : f32
    %224 = vector.broadcast %cst_53 : f32 to vector<8x128xf32>
    %225 = arith.addf %224, %223 : vector<8x128xf32>
    %226 = arith.divf %224, %225 : vector<8x128xf32>
    %227 = vector.extract_strided_slice %220 {offsets = [0, 128], sizes = [8, 128], strides = [1, 1]} : vector<8x512xf32> to vector<8x128xf32>
    %228 = arith.negf %227 : vector<8x128xf32>
    %229 = math.exp %228 : vector<8x128xf32>
    %cst_54 = arith.constant 1.000000e+00 : f32
    %230 = vector.broadcast %cst_54 : f32 to vector<8x128xf32>
    %231 = arith.addf %230, %229 : vector<8x128xf32>
    %232 = arith.divf %230, %231 : vector<8x128xf32>
    %233 = vector.extract_strided_slice %220 {offsets = [0, 256], sizes = [8, 128], strides = [1, 1]} : vector<8x512xf32> to vector<8x128xf32>
    %234 = math.tanh %233 : vector<8x128xf32>
    %235 = vector.extract_strided_slice %220 {offsets = [0, 384], sizes = [8, 128], strides = [1, 1]} : vector<8x512xf32> to vector<8x128xf32>
    %236 = arith.negf %235 : vector<8x128xf32>
    %237 = math.exp %236 : vector<8x128xf32>
    %cst_55 = arith.constant 1.000000e+00 : f32
    %238 = vector.broadcast %cst_55 : f32 to vector<8x128xf32>
    %239 = arith.addf %238, %237 : vector<8x128xf32>
    %240 = arith.divf %238, %239 : vector<8x128xf32>
    %241 = arith.mulf %232, %214 : vector<8x128xf32>
    %242 = arith.mulf %226, %234 : vector<8x128xf32>
    %243 = arith.addf %241, %242 : vector<8x128xf32>
    %244 = math.tanh %243 : vector<8x128xf32>
    %245 = arith.mulf %240, %244 : vector<8x128xf32>
    %c0_56 = arith.constant 0 : index
    %c0_57 = arith.constant 0 : index
    %246 = vector.load %arg9[%c0_56, %c0_57] : memref<8x128xf32, #tpu.memory_space<vmem>>, vector<8x128xf32>
    tpu.vector_store %arg9[%c0_56, %c0_57], %245 {strides = array<i32>} : memref<8x128xf32, #tpu.memory_space<vmem>>, vector<8x128xf32>,
    %c0_58 = arith.constant 0 : index
    %c0_59 = arith.constant 0 : index
    %247 = vector.load %arg10[%c0_58, %c0_59] : memref<8x128xf32, #tpu.memory_space<vmem>>, vector<8x128xf32>
    tpu.vector_store %arg10[%c0_58, %c0_59], %243 {strides = array<i32>} : memref<8x128xf32, #tpu.memory_space<vmem>>, vector<8x128xf32>,
    %c0_i32_60 = arith.constant 0 : i32
    %248 = arith.cmpi eq, %arg1, %c0_i32_60 : i32
    %249 = arith.extui %248 : i1 to i32
    %c0_i32_61 = arith.constant 0 : i32
    %250 = arith.cmpi ne, %249, %c0_i32_61 : i32
    scf.if %250 {
      %251 = arith.truncf %245 : vector<8x128xf32> to vector<8x128xbf16>
      %c0_62 = arith.constant 0 : index
      %c0_63 = arith.constant 0 : index
      %252 = vector.load %arg6[%c0_62, %c0_63] : memref<128x128xbf16, #tpu.memory_space<vmem>>, vector<128x128xbf16>
      %cst_64 = arith.constant dense<0.000000e+00> : vector<8x128xf32>
      %253 = tpu.matmul %251, %252, %cst_64 {dimension_numbers = #tpu.dot_dimension_numbers<[1], [0], [0], [1], [0, 0, 1, 1], [], []>} : vector<8x128xbf16>, vector<128x128xbf16>, vector<8x128xf32> -> vector<8x128xf32>
      %c0_65 = arith.constant 0 : index
      %c0_66 = arith.constant 0 : index
      %254 = vector.load %arg7[%c0_65, %c0_66] : memref<1x128xf32, #tpu.memory_space<vmem>>, vector<1x128xf32>
      %255 = vector.broadcast %254 : vector<1x128xf32> to vector<8x128xf32>
      %256 = arith.addf %253, %255 : vector<8x128xf32>
      %c0_67 = arith.constant 0 : index
      %c0_68 = arith.constant 0 : index
      %257 = vector.load %arg8[%c0_67, %c0_68] : memref<8x128xf32, #tpu.memory_space<vmem>>, vector<8x128xf32>
      tpu.vector_store %arg8[%c0_67, %c0_68], %256 {strides = array<i32>} : memref<8x128xf32, #tpu.memory_space<vmem>>, vector<8x128xf32>,
    } else {
    }
    return
  }
  func.func @transform_0(%arg0: i32, %arg1: i32) -> (i32, i32, i32) {
    %c0_i32 = arith.constant 0 : i32
    %c0_i32_0 = arith.constant 0 : i32
    return %arg0, %arg1, %c0_i32 : i32, i32, i32
  }
  func.func @transform_1(%arg0: i32, %arg1: i32) -> (i32, i32) {
    %c0_i32 = arith.constant 0 : i32
    %c0_i32_0 = arith.constant 0 : i32
    %c0_i32_1 = arith.constant 0 : i32
    return %c0_i32, %c0_i32_0 : i32, i32
  }
  func.func @transform_2(%arg0: i32, %arg1: i32) -> (i32, i32) {
    %c0_i32 = arith.constant 0 : i32
    %c0_i32_0 = arith.constant 0 : i32
    %c0_i32_1 = arith.constant 0 : i32
    return %c0_i32, %c0_i32_0 : i32, i32
  }
  func.func @transform_3(%arg0: i32, %arg1: i32) -> (i32, i32) {
    %c0_i32 = arith.constant 0 : i32
    %c0_i32_0 = arith.constant 0 : i32
    %c0_i32_1 = arith.constant 0 : i32
    return %c0_i32, %c0_i32_0 : i32, i32
  }
  func.func @transform_4(%arg0: i32, %arg1: i32) -> (i32, i32) {
    %c0_i32 = arith.constant 0 : i32
    %c0_i32_0 = arith.constant 0 : i32
    %c0_i32_1 = arith.constant 0 : i32
    return %c0_i32, %c0_i32_0 : i32, i32
  }
  func.func @transform_5(%arg0: i32, %arg1: i32) -> (i32, i32) {
    %c0_i32 = arith.constant 0 : i32
    %c0_i32_0 = arith.constant 0 : i32
    %c0_i32_1 = arith.constant 0 : i32
    return %c0_i32, %c0_i32_0 : i32, i32
  }
  func.func @transform_6(%arg0: i32, %arg1: i32) -> (i32, i32) {
    %c0_i32 = arith.constant 0 : i32
    %c0_i32_0 = arith.constant 0 : i32
    return %arg0, %c0_i32 : i32, i32
  }
}

</mosaic_0001>

<bundles_post_ra>
// kernel: tpu_custom_call.1
= control target key start
LH: loop header
LB: loop body
LE: loop exit
PB: predicated region body
PF: predicated region fallthrough
CT: control target
= control target key end

     0   :  { %11 = vsyncpa [#allocation6], 0  ;;  %s2684_s0 = inlined_call_operand.vmem [shape: bf16[1,64,32], index: 0, kind: input, shape index: {}]   ;;  %s2685_s1 = inlined_call_operand.hbm [shape: bf16[32,512], index: 1, kind: input, shape index: {}]   ;;  %s2686_s2 = inlined_call_operand.hbm [shape: bf16[128,512], index: 2, kind: input, shape index: {}]   ;;  %s2687_s3 = inlined_call_operand.vmem [shape: f32[1,512], index: 3, kind: input, shape index: {}]   ;;  %s2688_s4 = inlined_call_operand.hbm [shape: bf16[128,128], index: 4, kind: input, shape index: {}]   ;;  %s2689_s5 = inlined_call_operand.vmem [shape: f32[1,128], index: 5, kind: input, shape index: {}]   ;;  %s2690_s6 = inlined_call_operand.hbm [shape: f32[8,128], index: 6, kind: output, shape index: {}]  }
   0x1   :  { %12 = vsyncpa [#allocation9], 0 }
   0x2   :  { %13 = vsyncpa [#allocation7], 0  ;;  %s2053_s21 = smov [#allocation8]   ;;  %s2054_s23 = smov [#allocation5]  }
   0x3   :  { %s33_s22 = sshll.u32 %s2053_s21, 4  ;;  %s21_s24 = sshll.u32 %s2054_s23, 4  ;;  %s34_s22 = int_to_ptr.vmem [resolvable:$true] %s33_s22  ;;  %s22_s24 = int_to_ptr.vmem [resolvable:$true] %s21_s24 }
   0x4   :  { %s1975_s25 = scalar_lea.vmem %s34_s22, 4096  ;;  %p1980_p1 = scmp.lt.s32.totalorder %s34_s22, %s34_s22 }
   0x5   :  { %p1976_p0 = scmp.ne.s32.totalorder %s34_s22, %s1975_s25  ;;  %p1981_p2 = scmp.lt.s32.totalorder %s1975_s25, %s1975_s25 }
   0x7   :  { %p1982_p3 = por %p1981_p2, %p1980_p1 }
   0x9   :  { %p1983_p4 = pnand %p1982_p3, %p1976_p0 }
   0xb   :  { %1986 = shalt.err (!%p1983_p4)
}
   0xc   :  { %s2055_s26 = smov 256   ;;  %s2056_s27 = smov 16  }
   0xd   :  { %39 = dma.hbm_to_vmem [thread:$0]  %s2686_s2, 4096, %s34_s22, [#allocation9], %s2055_s26, %s2055_s26, %s2056_s27  }
   0xe   :  { %s1995_s30 = scalar_lea.vmem %s22_s24, 1024  ;;  %p2000_p6 = scmp.lt.s32.totalorder %s22_s24, %s22_s24 }
   0xf   :  { %p1996_p5 = scmp.ne.s32.totalorder %s22_s24, %s1995_s30  ;;  %p2001_p7 = scmp.lt.s32.totalorder %s1995_s30, %s1995_s30 }
  0x11   :  { %p2002_p8 = por %p2001_p7, %p2000_p6 }
  0x13   :  { %p2003_p9 = pnand %p2002_p8, %p1996_p5 }
  0x15   :  { %2006 = shalt.err (!%p2003_p9)
}
  0x16   :  { %27 = dma.hbm_to_vmem [thread:$0]  %s2685_s1, 1024, %s22_s24, [#allocation6], %s2055_s26, %s2055_s26, %s2056_s27  }
  0x17   :  { %s2057_s9 = smov [#allocation10]  }
  0x18   :  { %s47_s10 = sshll.u32 %s2057_s9, 4  ;;  %s48_s10 = int_to_ptr.vmem [resolvable:$true] %s47_s10 }
  0x19   :  { %s2015_s11 = scalar_lea.vmem %s48_s10, 1024  ;;  %p2020_p11 = scmp.lt.s32.totalorder %s48_s10, %s48_s10 }
  0x1a   :  { %p2016_p10 = scmp.ne.s32.totalorder %s48_s10, %s2015_s11  ;;  %p2021_p12 = scmp.lt.s32.totalorder %s2015_s11, %s2015_s11 }
  0x1c   :  { %p2022_p13 = por %p2021_p12, %p2020_p11 }
  0x1e   :  { %p2023_p0 = pnand %p2022_p13, %p2016_p10 }
  0x20   :  { %2026 = shalt.err (!%p2023_p0)
}
  0x21   :  { %s2058_s2 = smov 64   ;;  %s2059_s12 = smov 4  }
  0x22   :  { %53 = dma.hbm_to_vmem [thread:$0]  %s2688_s4, 1024, %s48_s10, [#allocation9], %s2058_s2, %s2058_s2, %s2059_s12  }
  0x23   :  { %2047 = dma.done.wait [#allocation6], 1024  }
  0x24   :  { %2048 = vsyncadd [#allocation6], 4294966272 }
  0x25   :  { %2049 = dma.done.wait [#allocation9], 5120  }
  0x26   :  { %2050 = vsyncadd [#allocation9], 4294962176  ;;  %v2691_v0 = vmov 0   ;;  %v1735_v1 = vld [vmem:[#allocation5 + $0x24] ss:$16 sps:$4 sm:$0xff]   ;;  %vm170_vm0 = vcmask 261120   ;;  %v90_v46 = vlaneseq }
  0x27   :  { %215 = vmatprep.mubr.bf16.mxu0 %v2691_v0  ;;  %288 = vmatprep.mubr.bf16.mxu1 %v2691_v0  ;;  %v1737_v2 = vld [vmem:[#allocation5 + $0x2c] ss:$16 sps:$4 sm:$0xff]   ;;  %v1739_v3 = vld [vmem:[#allocation5 + $0x20] ss:$16 sps:$4 sm:$0xff]   ;;  %v1740_v4 = vld [vmem:[#allocation5 + $0x28] ss:$16 sps:$4 sm:$0xff]  }
  0x28   :  { %195 = vmatprep.subr.bf16.mxu0 %v1735_v1  ;;  %268 = vmatprep.subr.bf16.mxu1 %v1737_v2  ;;  %v1741_v5 = vld [vmem:[#allocation5 + $0x4] ss:$16 sps:$4 sm:$0xff]   ;;  %v1743_v6 = vld [vmem:[#allocation5 + $0xc] ss:$16 sps:$4 sm:$0xff]   ;;  %v1745_v7 = vld [vmem:[#allocation5] ss:$16 sps:$4 sm:$0xff]  }
  0x29   :  { %196 = vmatpush1.bf16.msra.mxu0 %v1739_v3  ;;  %269 = vmatpush1.bf16.msra.mxu1 %v1740_v4  ;;  %v1746_v8 = vld [vmem:[#allocation5 + $0x8] ss:$16 sps:$4 sm:$0xff]   ;;  %v1747_v9 = vld [vmem:[%s2684_s0] sm:$0xff]   ;;  %v2116_v11 = vld [vmem:[#allocation8 + $0xec] ss:$16 sps:$4 sm:$0xff]   ;;  %v2061_v45 = vmov 0.0|0.0  }
  0x2a   :  { %197 = vmatprep.subr.bf16.mxu0 %v1741_v5  ;;  %270 = vmatprep.subr.bf16.mxu1 %v1743_v6  ;;  %v2114_v10 = vld [vmem:[#allocation8 + $0xe4] ss:$16 sps:$4 sm:$0xff]   ;;  %v2118_v12 = vld [vmem:[#allocation8 + $0xe0] ss:$16 sps:$4 sm:$0xff]   ;;  %v2120_v13 = vld [vmem:[#allocation8 + $0xe8] ss:$16 sps:$4 sm:$0xff]  }
  0x2b   :  { %v2123_v14 = vld [vmem:[#allocation8 + $0xc4] ss:$16 sps:$4 sm:$0xff]   ;;  %v2126_v15 = vld [vmem:[#allocation8 + $0xcc] ss:$16 sps:$4 sm:$0xff]   ;;  %v2130_v16 = vld [vmem:[#allocation8 + $0xc0] ss:$16 sps:$4 sm:$0xff]  }
  0x2c   :  { %v2134_v17 = vld [vmem:[#allocation8 + $0xc8] ss:$16 sps:$4 sm:$0xff]   ;;  %v2138_v18 = vld [vmem:[#allocation8 + $0xa4] ss:$16 sps:$4 sm:$0xff]   ;;  %v2145_v20 = vld [vmem:[#allocation8 + $0xac] ss:$16 sps:$4 sm:$0xff]  }
  0x2d   :  { %198 = vmatpush1.bf16.msra.mxu0 %v1745_v7  ;;  %271 = vmatpush1.bf16.msra.mxu1 %v1746_v8  ;;  %v1760_v19 = vld [vmem:[%s2684_s0 + $0x8] sm:$0xff]   ;;  %v2147_v21 = vld [vmem:[#allocation8 + $0xa0] ss:$16 sps:$4 sm:$0xff]   ;;  %v2155_v23 = vld [vmem:[#allocation8 + $0x84] ss:$16 sps:$4 sm:$0xff]   ;;  %v91_v47 = vshrl.u32 %v90_v46, 7 }
  0x2e   :  { %560 = vmatprep.subr.bf16.mxu0 %v2114_v10  ;;  %601 = vmatprep.subr.bf16.mxu1 %v2116_v11  ;;  %v2151_v22 = vld [vmem:[#allocation8 + $0xa8] ss:$16 sps:$4 sm:$0xff]   ;;  %v2157_v24 = vld [vmem:[#allocation8 + $0x8c] ss:$16 sps:$4 sm:$0xff]   ;;  %v2161_v25 = vld [vmem:[#allocation8 + $0x80] ss:$16 sps:$4 sm:$0xff]  }
  0x2f   :  { %v2165_v26 = vld [vmem:[#allocation8 + $0x88] ss:$16 sps:$4 sm:$0xff]   ;;  %v2169_v27 = vld [vmem:[#allocation8 + $0x64] ss:$16 sps:$4 sm:$0xff]   ;;  %v2171_v28 = vld [vmem:[#allocation8 + $0x6c] ss:$16 sps:$4 sm:$0xff]  }
  0x30   :  { %1621 = vmatmul.mubr.msk.bf16.vlgmr.msra.gmra.mxu0 %vm170_vm0, %v1747_v9  ;;  %1625 = vmatmul.mubr.msk.bf16.vlgmr.msra.gmra.mxu1 %vm170_vm0, %v1747_v9  ;;  %v1773_v29 = vld [vmem:[%s2684_s0 + $0x10] sm:$0xff]   ;;  %v2180_v31 = vld [vmem:[#allocation8 + $0x68] ss:$16 sps:$4 sm:$0xff]   ;;  %v2188_v33 = vld [vmem:[#allocation8 + $0x4c] ss:$16 sps:$4 sm:$0xff]   ;;  %v100_v48 = vsub.s32 2, %v91_v47 }
  0x31   :  { %561 = vmatpush1.bf16.msra.mxu0 %v2118_v12  ;;  %602 = vmatpush1.bf16.msra.mxu1 %v2120_v13  ;;  %v2178_v30 = vld [vmem:[#allocation8 + $0x60] ss:$16 sps:$4 sm:$0xff]   ;;  %v2184_v32 = vld [vmem:[#allocation8 + $0x44] ss:$16 sps:$4 sm:$0xff]   ;;  %v2194_v35 = vld [vmem:[#allocation8 + $0x48] ss:$16 sps:$4 sm:$0xff]  }
  0x32   :  { %562 = vmatprep.subr.bf16.mxu0 %v2123_v14  ;;  %603 = vmatprep.subr.bf16.mxu1 %v2126_v15  ;;  %v2192_v34 = vld [vmem:[#allocation8 + $0x40] ss:$16 sps:$4 sm:$0xff]   ;;  %v2198_v36 = vld [vmem:[#allocation8 + $0x24] ss:$16 sps:$4 sm:$0xff]   ;;  %v2202_v37 = vld [vmem:[#allocation8 + $0x2c] ss:$16 sps:$4 sm:$0xff]  }
  0x33   :  { %225 = vmatprep.mubr.bf16.mxu0 %v2691_v0  ;;  %298 = vmatprep.mubr.bf16.mxu1 %v2691_v0  ;;  %v1786_v38 = vld [vmem:[%s2684_s0 + $0x18] sm:$0xff]   ;;  %v2209_v39 = vld [vmem:[#allocation8 + $0x20] ss:$16 sps:$4 sm:$0xff]   ;;  %v2213_v41 = vld [vmem:[#allocation8 + $0x4] ss:$16 sps:$4 sm:$0xff]   ;;  %v92_v49 = vsub.s32 0, %v91_v47 }
  0x34   :  { %v2211_v40 = vld [vmem:[#allocation8 + $0x28] ss:$16 sps:$4 sm:$0xff]   ;;  %v2215_v42 = vld [vmem:[#allocation8 + $0xc] ss:$16 sps:$4 sm:$0xff]   ;;  %v2225_v43 = vld [vmem:[#allocation8] ss:$16 sps:$4 sm:$0xff]  }
  0x35   :  { %563 = vmatpush1.bf16.msra.mxu0 %v2130_v16  ;;  %604 = vmatpush1.bf16.msra.mxu1 %v2134_v17  ;;  %v2227_v44 = vld [vmem:[#allocation8 + $0x8] ss:$16 sps:$4 sm:$0xff]   ;;  %v104_v50 = vsub.s32 3, %v91_v47  ;;  %v88_v51 = vld [vmem:[%s2687_s3] sm:$0xf]  ;;  %v96_v55 = vsub.s32 1, %v91_v47 }
  0x36   :  { %564 = vmatprep.subr.bf16.mxu0 %v2138_v18  ;;  %605 = vmatprep.subr.bf16.mxu1 %v2145_v20  ;;  %v2278_v54 = vrot.slane %v88_v51, %v100_v48  ;;  %v93_v58 = vrot.slane %v88_v51, %v92_v49  ;;  %vm2063_vm1 = vmmov 0   ;;  %s2064_s23 = smov [#allocation11]  }
  0x37   :  { %v2284_v59 = vrot.slane %v88_v51, %v104_v50  ;;  %v97_v62 = vrot.slane %v88_v51, %v96_v55  ;;  %s1599_s24 = sshll.u32 %s2064_s23, 4  ;;  %s1600_s24 = int_to_ptr.vmem [resolvable:$true] %s1599_s24 }
  0x38   :  { %1622 = vmatmul.mubr.msk.bf16.gmra.mxu0 %vm170_vm0, %v1760_v19  ;;  %1626 = vmatmul.mubr.msk.bf16.gmra.mxu1 %vm170_vm0, %v1760_v19  ;;  %s2027_s25 = scalar_lea.vmem %s1600_s24, 128  ;;  %p2032_p2 = scmp.lt.s32.totalorder %s1600_s24, %s1600_s24 }
  0x39   :  { %565 = vmatpush1.bf16.msra.mxu0 %v2147_v21  ;;  %606 = vmatpush1.bf16.msra.mxu1 %v2151_v22  ;;  %p2028_p1 = scmp.ne.s32.totalorder %s1600_s24, %s2027_s25  ;;  %p2033_p3 = scmp.lt.s32.totalorder %s2027_s25, %s2027_s25 }
  0x3a   :  { %566 = vmatprep.subr.bf16.mxu0 %v2155_v23  ;;  %607 = vmatprep.subr.bf16.mxu1 %v2157_v24 }
  0x3b   :  { %235 = vmatprep.mubr.bf16.mxu0 %v2691_v0  ;;  %308 = vmatprep.mubr.bf16.mxu1 %v2691_v0  ;;  %p2034_p4 = por %p2033_p3, %p2032_p2 }
  0x3d   :  { %567 = vmatpush1.bf16.msra.mxu0 %v2161_v25  ;;  %608 = vmatpush1.bf16.msra.mxu1 %v2165_v26  ;;  %p2035_p5 = pnand %p2034_p4, %p2028_p1 }
  0x3e   :  { %568 = vmatprep.subr.bf16.mxu0 %v2169_v27  ;;  %609 = vmatprep.subr.bf16.mxu1 %v2171_v28 }
  0x40   :  { %1623 = vmatmul.mubr.msk.bf16.gmra.mxu0 %vm170_vm0, %v1773_v29  ;;  %1627 = vmatmul.mubr.msk.bf16.gmra.mxu1 %vm170_vm0, %v1773_v29 }
  0x41   :  { %569 = vmatpush1.bf16.msra.mxu0 %v2178_v30  ;;  %610 = vmatpush1.bf16.msra.mxu1 %v2180_v31 }
  0x42   :  { %570 = vmatprep.subr.bf16.mxu0 %v2184_v32  ;;  %611 = vmatprep.subr.bf16.mxu1 %v2188_v33 }
  0x43   :  { %245 = vmatprep.mubr.bf16.mxu0 %v2691_v0  ;;  %318 = vmatprep.mubr.bf16.mxu1 %v2691_v0 }
  0x45   :  { %571 = vmatpush1.bf16.msra.mxu0 %v2192_v34  ;;  %612 = vmatpush1.bf16.msra.mxu1 %v2194_v35 }
  0x46   :  { %572 = vmatprep.subr.bf16.mxu0 %v2198_v36  ;;  %613 = vmatprep.subr.bf16.mxu1 %v2202_v37 }
  0x48   :  { %1624 = vmatmul.mubr.msk.bf16.gmra.mxu0 %vm170_vm0, %v1786_v38  ;;  %1628 = vmatmul.mubr.msk.bf16.gmra.mxu1 %vm170_vm0, %v1786_v38 }
  0x49   :  { %573 = vmatpush1.bf16.msra.mxu0 %v2209_v39  ;;  %614 = vmatpush1.bf16.msra.mxu1 %v2211_v40 }
  0x4a   :  { %574 = vmatprep.subr.bf16.mxu0 %v2213_v41  ;;  %615 = vmatprep.subr.bf16.mxu1 %v2215_v42 }
  0x4b   :  { %592 = vmatprep.mubr.bf16.mxu0 %v2691_v0  ;;  %633 = vmatprep.mubr.bf16.mxu1 %v2691_v0 }
  0x4d   :  { %575 = vmatpush1.bf16.msra.mxu0 %v2225_v43  ;;  %616 = vmatpush1.bf16.msra.mxu1 %v2227_v44 }
  0x4e   :  { %675 = vmatprep.subr.bf16.mxu0 %v2114_v10  ;;  %716 = vmatprep.subr.bf16.mxu1 %v2116_v11 }
  0x50   :  { %593 = vmatmul.mubr.bf16.vlgmr.msra.gmra.mxu0 %v2061_v45  ;;  %634 = vmatmul.mubr.bf16.vlgmr.msra.gmra.mxu1 %v2061_v45 }
  0x51   :  { %676 = vmatpush1.bf16.msra.mxu0 %v2118_v12  ;;  %717 = vmatpush1.bf16.msra.mxu1 %v2120_v13 }
  0x52   :  { %677 = vmatprep.subr.bf16.mxu0 %v2123_v14  ;;  %718 = vmatprep.subr.bf16.mxu1 %v2126_v15 }
  0x53   :  { %707 = vmatprep.mubr.bf16.mxu0 %v2691_v0  ;;  %748 = vmatprep.mubr.bf16.mxu1 %v2691_v0 }
  0x55   :  { %678 = vmatpush1.bf16.msra.mxu0 %v2130_v16  ;;  %719 = vmatpush1.bf16.msra.mxu1 %v2134_v17 }
  0x56   :  { %679 = vmatprep.subr.bf16.mxu0 %v2138_v18  ;;  %720 = vmatprep.subr.bf16.mxu1 %v2145_v20 }
  0x59   :  { %680 = vmatpush1.bf16.msra.mxu0 %v2147_v21  ;;  %721 = vmatpush1.bf16.msra.mxu1 %v2151_v22 }
  0x5a   :  { %681 = vmatprep.subr.bf16.mxu0 %v2155_v23  ;;  %722 = vmatprep.subr.bf16.mxu1 %v2157_v24 }
  0x5d   :  { %682 = vmatpush1.bf16.msra.mxu0 %v2161_v25  ;;  %723 = vmatpush1.bf16.msra.mxu1 %v2165_v26 }
  0x5e   :  { %683 = vmatprep.subr.bf16.mxu0 %v2169_v27  ;;  %724 = vmatprep.subr.bf16.mxu1 %v2171_v28 }
  0x61   :  { %684 = vmatpush1.bf16.msra.mxu0 %v2178_v30  ;;  %725 = vmatpush1.bf16.msra.mxu1 %v2180_v31 }
  0x62   :  { %685 = vmatprep.subr.bf16.mxu0 %v2184_v32  ;;  %726 = vmatprep.subr.bf16.mxu1 %v2188_v33 }
  0x65   :  { %686 = vmatpush1.bf16.msra.mxu0 %v2192_v34  ;;  %727 = vmatpush1.bf16.msra.mxu1 %v2194_v35 }
  0x66   :  { %687 = vmatprep.subr.bf16.mxu0 %v2198_v36  ;;  %728 = vmatprep.subr.bf16.mxu1 %v2202_v37 }
  0x69   :  { %688 = vmatpush1.bf16.msra.mxu0 %v2209_v39  ;;  %729 = vmatpush1.bf16.msra.mxu1 %v2211_v40 }
  0x6a   :  { %689 = vmatprep.subr.bf16.mxu0 %v2213_v41  ;;  %730 = vmatprep.subr.bf16.mxu1 %v2215_v42 }
  0x6d   :  { %690 = vmatpush1.bf16.msra.mxu0 %v2225_v43  ;;  %731 = vmatpush1.bf16.msra.mxu1 %v2227_v44 }
  0x6e   :  { %790 = vmatprep.subr.bf16.mxu0 %v2114_v10  ;;  %831 = vmatprep.subr.bf16.mxu1 %v2116_v11 }
  0xf0   :  { %v2274_v52 = vpop.f32.mrf.mxu0  ;;  %v2276_v53 = vpop.f32.mrf.mxu1 }
  0xf2   :  { %v2280_v56 = vpop.f32.mrf.mxu0  ;;  %v2282_v57 = vpop.f32.mrf.mxu1 }
  0xf4   :  { %v221_v60 = vpop.f32.mrf.mxu0  ;;  %v294_v61 = vpop.f32.mrf.mxu1 }
  0xf5   :  { %v2286_v63 = vadd.f32 %v221_v60, %v93_v58  ;;  %v2289_v1 = vadd.f32 %v294_v61, %v2278_v54 }
  0xf6   :  { %v223_v2 = vpop.f32.mrf.mxu0  ;;  %v296_v3 = vpop.f32.mrf.mxu1 }
  0xf7   :  { %v2291_v4 = vadd.f32 %v223_v2, %v97_v62  ;;  %v2294_v5 = vadd.f32 %v296_v3, %v2284_v59 }
  0xf8   :  { %v227_v6 = vpop.f32.mrf.mxu0  ;;  %v300_v7 = vpop.f32.mrf.mxu1 }
  0xf9   :  { %v2296_v8 = vadd.f32 %v227_v6, %v93_v58  ;;  %v2299_v9 = vadd.f32 %v300_v7, %v2278_v54 }
  0xfa   :  { %v229_v19 = vpop.f32.mrf.mxu0  ;;  %v302_v29 = vpop.f32.mrf.mxu1 }
  0xfb   :  { %2693 = vst [vmem:[#allocation15_spill] sm:$0xff] %v2299_v9  ;;  %v2301_v38 = vadd.f32 %v229_v19, %v97_v62  ;;  %v2304_v45 = vadd.f32 %v302_v29, %v2284_v59 }
  0xfc   :  { %v231_v46 = vpop.f32.mrf.mxu0  ;;  %v304_v47 = vpop.f32.mrf.mxu1 }
  0xfd   :  { %v2306_v48 = vadd.f32 %v231_v46, %v93_v58  ;;  %v2309_v49 = vadd.f32 %v304_v47, %v2278_v54 }
  0xfe   :  { %v233_v50 = vpop.f32.mrf.mxu0  ;;  %v306_v51 = vpop.f32.mrf.mxu1 }
  0xff   :  { %2694 = vst [vmem:[#allocation16_spill] sm:$0xff] %v2306_v48  ;;  %2695 = vst [vmem:[#allocation17_spill] sm:$0xff] %v2309_v49  ;;  %v2311_v55 = vadd.f32 %v233_v50, %v97_v62  ;;  %v2314_v60 = vadd.f32 %v306_v51, %v2284_v59 }
 0x100   :  { %v237_v61 = vpop.f32.mrf.mxu0  ;;  %v310_v2 = vpop.f32.mrf.mxu1 }
 0x101   :  { %2696 = vst [vmem:[#allocation18_spill] sm:$0xff] %v2311_v55  ;;  %2697 = vst [vmem:[#allocation19_spill] sm:$0xff] %v2314_v60  ;;  %v2316_v3 = vadd.f32 %v237_v61, %v93_v58  ;;  %v2319_v6 = vadd.f32 %v310_v2, %v2278_v54 }
 0x102   :  { %v239_v7 = vpop.f32.mrf.mxu0  ;;  %v312_v19 = vpop.f32.mrf.mxu1 }
 0x103   :  { %2698 = vst [vmem:[#allocation20_spill] sm:$0xff] %v2316_v3  ;;  %2699 = vst [vmem:[#allocation21_spill] sm:$0xff] %v2319_v6  ;;  %v2321_v29 = vadd.f32 %v239_v7, %v97_v62  ;;  %v2324_v46 = vadd.f32 %v312_v19, %v2284_v59 }
 0x104   :  { %v241_v47 = vpop.f32.mrf.mxu0  ;;  %v314_v50 = vpop.f32.mrf.mxu1 }
 0x105   :  { %2700 = vst [vmem:[#allocation22_spill] sm:$0xff] %v2321_v29  ;;  %2701 = vst [vmem:[#allocation23_spill] sm:$0xff] %v2324_v46  ;;  %v2326_v0 = vadd.f32 %v241_v47, %v93_v58  ;;  %v2329_v51 = vadd.f32 %v314_v50, %v2278_v54 }
 0x106   :  { %v243_v49 = vpop.f32.mrf.mxu0  ;;  %v316_v61 = vpop.f32.mrf.mxu1 }
 0x107   :  { %2702 = vst [vmem:[#allocation24_spill] sm:$0xff] %v2326_v0  ;;  %2703 = vst [vmem:[#allocation25_spill] sm:$0xff] %v2329_v51  ;;  %v2331_v3 = vadd.f32 %v243_v49, %v97_v62  ;;  %v2334_v2 = vadd.f32 %v316_v61, %v2284_v59 }
 0x108   :  { %v247_v6 = vpop.f32.mrf.mxu0  ;;  %v320_v7 = vpop.f32.mrf.mxu1 }
 0x109   :  { %2704 = vst [vmem:[#allocation26_spill] sm:$0xff] %v2331_v3  ;;  %2705 = vst [vmem:[#allocation27_spill] sm:$0xff] %v2334_v2  ;;  %v2336_v29 = vadd.f32 %v247_v6, %v93_v58  ;;  %v2339_v19 = vadd.f32 %v320_v7, %v2278_v54 }
 0x10a   :  { %v249_v46 = vpop.f32.mrf.mxu0  ;;  %v322_v47 = vpop.f32.mrf.mxu1 }
 0x10b   :  { %2706 = vst [vmem:[#allocation28_spill] sm:$0xff] %v2336_v29  ;;  %2707 = vst [vmem:[#allocation29_spill] sm:$0xff] %v2339_v19  ;;  %v2341_v0 = vadd.f32 %v249_v46, %v97_v62  ;;  %v2344_v50 = vadd.f32 %v322_v47, %v2284_v59  ;;  %v218_v29 = vadd.f32 %v2274_v52, %v93_v58 }
 0x10c   :  { %v251_v51 = vpop.f32.mrf.mxu0  ;;  %v324_v49 = vpop.f32.mrf.mxu1  ;;  %v220_v47 = vadd.f32 %v2280_v56, %v97_v62 }
 0x10d   :  { %2708 = vst [vmem:[#allocation30_spill] sm:$0xff] %v2341_v0  ;;  %2709 = vst [vmem:[#allocation31_spill] sm:$0xff] %v2344_v50  ;;  %v2346_v3 = vadd.f32 %v251_v51, %v93_v58  ;;  %v2349_v61 = vadd.f32 %v324_v49, %v2278_v54  ;;  %v293_v58 = vadd.f32 %v2282_v57, %v2284_v59 }
 0x10e   :  { %v253_v2 = vpop.f32.mrf.mxu0  ;;  %v326_v6 = vpop.f32.mrf.mxu1 }
 0x10f   :  { %2710 = vst [vmem:[#allocation32_spill] sm:$0xff] %v2346_v3  ;;  %2711 = vst [vmem:[#allocation33_spill] sm:$0xff] %v2349_v61  ;;  %v2352_v7 = vadd.f32 %v253_v2, %v97_v62  ;;  %v2355_v19 = vadd.f32 %v326_v6, %v2284_v59  ;;  %v291_v6 = vadd.f32 %v2276_v53, %v2278_v54 }
 0x110   :  { %v594_v46 = vpop.f32.mrf.mxu0  ;;  %v635_v0 = vpop.f32.mrf.mxu1 }
 0x111   :  { %v642_v50 = vadd.f32 %v594_v46, %v218_v29  ;;  %v644_v29 = vadd.f32 %v635_v0, %v291_v6 }
 0x112   :  { %v596_v60 = vpop.f32.mrf.mxu0  ;;  %v637_v51 = vpop.f32.mrf.mxu1 }
 0x113   :  { %v1661_v3 = vmul.f32 -1.442695, %v642_v50  ;;  %v643_v55 = vadd.f32 %v596_v60, %v220_v47  ;;  %v645_v2 = vadd.f32 %v637_v51, %v293_v58 }
 0x114   :  { %v598_v49 = vpop.f32.mrf.mxu0  ;;  %v639_v61 = vpop.f32.mrf.mxu1 }
 0x115   :  { %1807 = vpow2.f32 %v1661_v3  ;;  %v1662_v48 = vmul.f32 -1.442695, %v643_v55  ;;  %v1663_v56 = vmul.f32 -1.442695, %v645_v2  ;;  %v2712_v49 = vmov 0  }
 0x116   :  { %v599_v9 = vpop.f32.mrf.mxu0  ;;  %v640_v52 = vpop.f32.mrf.mxu1 }
 0x117   :  { %1809 = vpow2.f32 %v1662_v48 }
 0x118   :  { %1811 = vpow2.f32 %v1663_v56 }
 0x122   :  { %v1808_v62 = vpop.eup %1807 }
 0x123   :  { %v649_v46 = vadd.f32 1.0, %v1808_v62 }
 0x124   :  { %v1810_v50 = vpop.eup %1809 }
 0x125   :  { %1813 = vrcp.f32 %v649_v46  ;;  %v655_v60 = vadd.f32 1.0, %v1810_v50  ;;  %v1812_v9 = vpop.eup %1811 }
 0x126   :  { %1815 = vtanh.f32 %v644_v29  ;;  %v662_v61 = vadd.f32 1.0, %v1812_v9 }
 0x127   :  { %1817 = vrcp.f32 %v655_v60 }
 0x128   :  { %1819 = vrcp.f32 %v662_v61 }
 0x132   :  { %v1814_v55 = vpop.eup %1813 }
 0x133   :  { %v1816_v48 = vpop.eup %1815 }
 0x134   :  { %v1818_v3 = vpop.eup %1817  ;;  %v666_v59 = vmul.f32 %v1816_v48, %v1814_v55 }
 0x135   :  { %v665_v57 = vmul.f32 0.0, %v1818_v3  ;;  %v1820_v0 = vpop.eup %1819 }
 0x137   :  { %v2362_v47 = vadd.f32 %v666_v59, %v665_v57 }
 0x139   :  { %1821 = vtanh.f32 %v2362_v47 }
 0x146   :  { %v1822_v53 = vpop.eup %1821 }
 0x147   :  { %v669_v54 = vmul.f32 %v1822_v53, %v1820_v0 }
 0x149   :  { %v674_v51 = vpack.c.bf16 %v669_v54, %v669_v54 }
 0x14b   :  { %708 = vmatmul.mubr.bf16.vlgmr.msra.gmra.mxu0 %v674_v51  ;;  %749 = vmatmul.mubr.bf16.vlgmr.msra.gmra.mxu1 %v674_v51 }
 0x14c   :  { %791 = vmatpush1.bf16.msra.mxu0 %v2118_v12  ;;  %832 = vmatpush1.bf16.msra.mxu1 %v2120_v13 }
 0x14d   :  { %792 = vmatprep.subr.bf16.mxu0 %v2123_v14  ;;  %833 = vmatprep.subr.bf16.mxu1 %v2126_v15 }
 0x14e   :  { %822 = vmatprep.mubr.bf16.mxu0 %v2712_v49  ;;  %863 = vmatprep.mubr.bf16.mxu1 %v2712_v49 }
 0x150   :  { %793 = vmatpush1.bf16.msra.mxu0 %v2130_v16  ;;  %834 = vmatpush1.bf16.msra.mxu1 %v2134_v17 }
 0x151   :  { %794 = vmatprep.subr.bf16.mxu0 %v2138_v18  ;;  %835 = vmatprep.subr.bf16.mxu1 %v2145_v20 }
 0x154   :  { %795 = vmatpush1.bf16.msra.mxu0 %v2147_v21  ;;  %836 = vmatpush1.bf16.msra.mxu1 %v2151_v22 }
 0x155   :  { %796 = vmatprep.subr.bf16.mxu0 %v2155_v23  ;;  %837 = vmatprep.subr.bf16.mxu1 %v2157_v24 }
 0x158   :  { %797 = vmatpush1.bf16.msra.mxu0 %v2161_v25  ;;  %838 = vmatpush1.bf16.msra.mxu1 %v2165_v26 }
 0x159   :  { %798 = vmatprep.subr.bf16.mxu0 %v2169_v27  ;;  %839 = vmatprep.subr.bf16.mxu1 %v2171_v28 }
 0x15c   :  { %799 = vmatpush1.bf16.msra.mxu0 %v2178_v30  ;;  %840 = vmatpush1.bf16.msra.mxu1 %v2180_v31 }
 0x15d   :  { %800 = vmatprep.subr.bf16.mxu0 %v2184_v32  ;;  %841 = vmatprep.subr.bf16.mxu1 %v2188_v33 }
 0x160   :  { %801 = vmatpush1.bf16.msra.mxu0 %v2192_v34  ;;  %842 = vmatpush1.bf16.msra.mxu1 %v2194_v35 }
 0x161   :  { %802 = vmatprep.subr.bf16.mxu0 %v2198_v36  ;;  %843 = vmatprep.subr.bf16.mxu1 %v2202_v37 }
 0x164   :  { %803 = vmatpush1.bf16.msra.mxu0 %v2209_v39  ;;  %844 = vmatpush1.bf16.msra.mxu1 %v2211_v40 }
 0x165   :  { %804 = vmatprep.subr.bf16.mxu0 %v2213_v41  ;;  %845 = vmatprep.subr.bf16.mxu1 %v2215_v42 }
 0x168   :  { %805 = vmatpush1.bf16.msra.mxu0 %v2225_v43  ;;  %846 = vmatpush1.bf16.msra.mxu1 %v2227_v44 }
 0x169   :  { %905 = vmatprep.subr.bf16.mxu0 %v2114_v10  ;;  %946 = vmatprep.subr.bf16.mxu1 %v2116_v11 }
 0x20b   :  { %v709_v52 = vpop.f32.mrf.mxu0  ;;  %v750_v58 = vpop.f32.mrf.mxu1 }
 0x20c   :  { %v757_v2 = vadd.f32 %v709_v52, %v2286_v63  ;;  %v759_v3 = vadd.f32 %v750_v58, %v2289_v1 }
 0x20d   :  { %v711_v6 = vpop.f32.mrf.mxu0  ;;  %v752_v56 = vpop.f32.mrf.mxu1 }
 0x20e   :  { %v1664_v62 = vmul.f32 -1.442695, %v757_v2  ;;  %v758_v29 = vadd.f32 %v711_v6, %v2291_v4  ;;  %v760_v48 = vadd.f32 %v752_v56, %v2294_v5 }
 0x20f   :  { %v713_v46 = vpop.f32.mrf.mxu0  ;;  %v754_v50 = vpop.f32.mrf.mxu1 }
 0x210   :  { %1823 = vpow2.f32 %v1664_v62  ;;  %v1665_v60 = vmul.f32 -1.442695, %v758_v29  ;;  %v1666_v61 = vmul.f32 -1.442695, %v760_v48 }
 0x211   :  { %v714_v9 = vpop.f32.mrf.mxu0  ;;  %v755_v55 = vpop.f32.mrf.mxu1 }
 0x212   :  { %1825 = vpow2.f32 %v1665_v60 }
 0x213   :  { %1827 = vtanh.f32 %v759_v3 }
 0x214   :  { %1829 = vpow2.f32 %v1666_v61 }
 0x21d   :  { %v1824_v57 = vpop.eup %1823 }
 0x21e   :  { %v764_v59 = vadd.f32 1.0, %v1824_v57 }
 0x21f   :  { %v1826_v63 = vpop.eup %1825 }
 0x220   :  { %1831 = vrcp.f32 %v764_v59  ;;  %v770_v0 = vadd.f32 1.0, %v1826_v63  ;;  %v1828_v4 = vpop.eup %1827 }
 0x221   :  { %v1830_v53 = vpop.eup %1829 }
 0x222   :  { %1833 = vrcp.f32 %v770_v0  ;;  %v777_v2 = vadd.f32 1.0, %v1830_v53  ;;  %v2713_v0 = vld [vmem:[#allocation15_spill] sm:$0xff] }
 0x224   :  { %1835 = vrcp.f32 %v777_v2 }
 0x22d   :  { %v1832_v54 = vpop.eup %1831 }
 0x22e   :  { %v781_v51 = vmul.f32 %v1832_v54, %v1828_v4 }
 0x22f   :  { %v1834_v52 = vpop.eup %1833 }
 0x230   :  { %v780_v6 = vmul.f32 %v1834_v52, %v2362_v47 }
 0x231   :  { %v1836_v1 = vpop.eup %1835 }
 0x232   :  { %v2404_v5 = vadd.f32 %v781_v51, %v780_v6 }
 0x234   :  { %1837 = vtanh.f32 %v2404_v5 }
 0x241   :  { %v1838_v58 = vpop.eup %1837 }
 0x242   :  { %v784_v56 = vmul.f32 %v1838_v58, %v1836_v1 }
 0x244   :  { %v789_v62 = vpack.c.bf16 %v784_v56, %v784_v56 }
 0x246   :  { %823 = vmatmul.mubr.bf16.vlgmr.msra.gmra.mxu0 %v789_v62  ;;  %864 = vmatmul.mubr.bf16.vlgmr.msra.gmra.mxu1 %v789_v62 }
 0x247   :  { %906 = vmatpush1.bf16.msra.mxu0 %v2118_v12  ;;  %947 = vmatpush1.bf16.msra.mxu1 %v2120_v13 }
 0x248   :  { %907 = vmatprep.subr.bf16.mxu0 %v2123_v14  ;;  %948 = vmatprep.subr.bf16.mxu1 %v2126_v15 }
 0x249   :  { %937 = vmatprep.mubr.bf16.mxu0 %v2712_v49  ;;  %978 = vmatprep.mubr.bf16.mxu1 %v2712_v49 }
 0x24b   :  { %908 = vmatpush1.bf16.msra.mxu0 %v2130_v16  ;;  %949 = vmatpush1.bf16.msra.mxu1 %v2134_v17 }
 0x24c   :  { %909 = vmatprep.subr.bf16.mxu0 %v2138_v18  ;;  %950 = vmatprep.subr.bf16.mxu1 %v2145_v20 }
 0x24f   :  { %910 = vmatpush1.bf16.msra.mxu0 %v2147_v21  ;;  %951 = vmatpush1.bf16.msra.mxu1 %v2151_v22 }
 0x250   :  { %911 = vmatprep.subr.bf16.mxu0 %v2155_v23  ;;  %952 = vmatprep.subr.bf16.mxu1 %v2157_v24 }
 0x253   :  { %912 = vmatpush1.bf16.msra.mxu0 %v2161_v25  ;;  %953 = vmatpush1.bf16.msra.mxu1 %v2165_v26 }
 0x254   :  { %913 = vmatprep.subr.bf16.mxu0 %v2169_v27  ;;  %954 = vmatprep.subr.bf16.mxu1 %v2171_v28 }
 0x257   :  { %914 = vmatpush1.bf16.msra.mxu0 %v2178_v30  ;;  %955 = vmatpush1.bf16.msra.mxu1 %v2180_v31 }
 0x258   :  { %915 = vmatprep.subr.bf16.mxu0 %v2184_v32  ;;  %956 = vmatprep.subr.bf16.mxu1 %v2188_v33 }
 0x25b   :  { %916 = vmatpush1.bf16.msra.mxu0 %v2192_v34  ;;  %957 = vmatpush1.bf16.msra.mxu1 %v2194_v35 }
 0x25c   :  { %917 = vmatprep.subr.bf16.mxu0 %v2198_v36  ;;  %958 = vmatprep.subr.bf16.mxu1 %v2202_v37 }
 0x25f   :  { %918 = vmatpush1.bf16.msra.mxu0 %v2209_v39  ;;  %959 = vmatpush1.bf16.msra.mxu1 %v2211_v40 }
 0x260   :  { %919 = vmatprep.subr.bf16.mxu0 %v2213_v41  ;;  %960 = vmatprep.subr.bf16.mxu1 %v2215_v42 }
 0x263   :  { %920 = vmatpush1.bf16.msra.mxu0 %v2225_v43  ;;  %961 = vmatpush1.bf16.msra.mxu1 %v2227_v44 }
 0x264   :  { %1020 = vmatprep.subr.bf16.mxu0 %v2114_v10  ;;  %1061 = vmatprep.subr.bf16.mxu1 %v2116_v11 }
 0x306   :  { %v824_v47 = vpop.f32.mrf.mxu0  ;;  %v865_v29 = vpop.f32.mrf.mxu1 }
 0x307   :  { %v872_v46 = vadd.f32 %v824_v47, %v2296_v8  ;;  %v874_v4 = vadd.f32 %v865_v29, %v2713_v0 }
 0x308   :  { %v826_v50 = vpop.f32.mrf.mxu0  ;;  %v867_v60 = vpop.f32.mrf.mxu1 }
 0x309   :  { %v1667_v9 = vmul.f32 -1.442695, %v872_v46  ;;  %v873_v55 = vadd.f32 %v826_v50, %v2301_v38  ;;  %v875_v63 = vadd.f32 %v867_v60, %v2304_v45 }
 0x30a   :  { %v828_v48 = vpop.f32.mrf.mxu0  ;;  %v869_v3 = vpop.f32.mrf.mxu1 }
 0x30b   :  { %1839 = vpow2.f32 %v1667_v9  ;;  %v1668_v61 = vmul.f32 -1.442695, %v873_v55  ;;  %v1669_v53 = vmul.f32 -1.442695, %v875_v63  ;;  %v2714_v9 = vld [vmem:[#allocation16_spill] sm:$0xff] }
 0x30c   :  { %v829_v57 = vpop.f32.mrf.mxu0  ;;  %v870_v59 = vpop.f32.mrf.mxu1 }
 0x30d   :  { %1841 = vpow2.f32 %v1668_v61  ;;  %v2715_v57 = vld [vmem:[#allocation18_spill] sm:$0xff] }
 0x30e   :  { %1843 = vtanh.f32 %v874_v4 }
 0x30f   :  { %1845 = vpow2.f32 %v1669_v53 }
 0x318   :  { %v1840_v54 = vpop.eup %1839 }
 0x319   :  { %v879_v51 = vadd.f32 1.0, %v1840_v54 }
 0x31a   :  { %v1842_v8 = vpop.eup %1841 }
 0x31b   :  { %1847 = vrcp.f32 %v879_v51  ;;  %v885_v52 = vadd.f32 1.0, %v1842_v8  ;;  %v1844_v38 = vpop.eup %1843  ;;  %v2716_v51 = vld [vmem:[#allocation19_spill] sm:$0xff]  ;;  %v2717_v8 = vld [vmem:[#allocation17_spill] sm:$0xff] }
 0x31c   :  { %v1846_v2 = vpop.eup %1845 }
 0x31d   :  { %1849 = vrcp.f32 %v885_v52  ;;  %v892_v56 = vadd.f32 1.0, %v1846_v2 }
 0x31f   :  { %1851 = vrcp.f32 %v892_v56 }
 0x328   :  { %v1848_v6 = vpop.eup %1847 }
 0x329   :  { %v896_v1 = vmul.f32 %v1848_v6, %v1844_v38 }
 0x32a   :  { %v1850_v58 = vpop.eup %1849 }
 0x32b   :  { %v895_v62 = vmul.f32 %v1850_v58, %v2404_v5 }
 0x32c   :  { %v1852_v47 = vpop.eup %1851 }
 0x32d   :  { %v2446_v45 = vadd.f32 %v896_v1, %v895_v62 }
 0x32f   :  { %1853 = vtanh.f32 %v2446_v45 }
 0x33c   :  { %v1854_v29 = vpop.eup %1853 }
 0x33d   :  { %v899_v46 = vmul.f32 %v1854_v29, %v1852_v47 }
 0x33f   :  { %v904_v50 = vpack.c.bf16 %v899_v46, %v899_v46 }
 0x341   :  { %938 = vmatmul.mubr.bf16.vlgmr.msra.gmra.mxu0 %v904_v50  ;;  %979 = vmatmul.mubr.bf16.vlgmr.msra.gmra.mxu1 %v904_v50 }
 0x342   :  { %1021 = vmatpush1.bf16.msra.mxu0 %v2118_v12  ;;  %1062 = vmatpush1.bf16.msra.mxu1 %v2120_v13 }
 0x343   :  { %1022 = vmatprep.subr.bf16.mxu0 %v2123_v14  ;;  %1063 = vmatprep.subr.bf16.mxu1 %v2126_v15 }
 0x344   :  { %1052 = vmatprep.mubr.bf16.mxu0 %v2712_v49  ;;  %1093 = vmatprep.mubr.bf16.mxu1 %v2712_v49 }
 0x346   :  { %1023 = vmatpush1.bf16.msra.mxu0 %v2130_v16  ;;  %1064 = vmatpush1.bf16.msra.mxu1 %v2134_v17 }
 0x347   :  { %1024 = vmatprep.subr.bf16.mxu0 %v2138_v18  ;;  %1065 = vmatprep.subr.bf16.mxu1 %v2145_v20 }
 0x34a   :  { %1025 = vmatpush1.bf16.msra.mxu0 %v2147_v21  ;;  %1066 = vmatpush1.bf16.msra.mxu1 %v2151_v22 }
 0x34b   :  { %1026 = vmatprep.subr.bf16.mxu0 %v2155_v23  ;;  %1067 = vmatprep.subr.bf16.mxu1 %v2157_v24 }
 0x34e   :  { %1027 = vmatpush1.bf16.msra.mxu0 %v2161_v25  ;;  %1068 = vmatpush1.bf16.msra.mxu1 %v2165_v26 }
 0x34f   :  { %1028 = vmatprep.subr.bf16.mxu0 %v2169_v27  ;;  %1069 = vmatprep.subr.bf16.mxu1 %v2171_v28 }
 0x352   :  { %1029 = vmatpush1.bf16.msra.mxu0 %v2178_v30  ;;  %1070 = vmatpush1.bf16.msra.mxu1 %v2180_v31 }
 0x353   :  { %1030 = vmatprep.subr.bf16.mxu0 %v2184_v32  ;;  %1071 = vmatprep.subr.bf16.mxu1 %v2188_v33 }
 0x356   :  { %1031 = vmatpush1.bf16.msra.mxu0 %v2192_v34  ;;  %1072 = vmatpush1.bf16.msra.mxu1 %v2194_v35 }
 0x357   :  { %1032 = vmatprep.subr.bf16.mxu0 %v2198_v36  ;;  %1073 = vmatprep.subr.bf16.mxu1 %v2202_v37 }
 0x35a   :  { %1033 = vmatpush1.bf16.msra.mxu0 %v2209_v39  ;;  %1074 = vmatpush1.bf16.msra.mxu1 %v2211_v40 }
 0x35b   :  { %1034 = vmatprep.subr.bf16.mxu0 %v2213_v41  ;;  %1075 = vmatprep.subr.bf16.mxu1 %v2215_v42 }
 0x35e   :  { %1035 = vmatpush1.bf16.msra.mxu0 %v2225_v43  ;;  %1076 = vmatpush1.bf16.msra.mxu1 %v2227_v44 }
 0x35f   :  { %1135 = vmatprep.subr.bf16.mxu0 %v2114_v10  ;;  %1176 = vmatprep.subr.bf16.mxu1 %v2116_v11 }
 0x401   :  { %v939_v5 = vpop.f32.mrf.mxu0  ;;  %v980_v60 = vpop.f32.mrf.mxu1 }
 0x402   :  { %v987_v55 = vadd.f32 %v939_v5, %v2714_v9  ;;  %v989_v11 = vadd.f32 %v980_v60, %v2717_v8  ;;  %v2546_v8 = vld [vmem:[#allocation8 + $0xcc] ss:$16 sps:$4 sm:$0xff]  }
 0x403   :  { %v941_v48 = vpop.f32.mrf.mxu0  ;;  %v982_v3 = vpop.f32.mrf.mxu1 }
 0x404   :  { %v1670_v61 = vmul.f32 -1.442695, %v987_v55  ;;  %v988_v59 = vadd.f32 %v941_v48, %v2715_v57  ;;  %v990_v10 = vadd.f32 %v982_v3, %v2716_v51  ;;  %v2540_v51 = vld [vmem:[#allocation8 + $0xe8] ss:$16 sps:$4 sm:$0xff]  }
 0x405   :  { %v943_v63 = vpop.f32.mrf.mxu0  ;;  %v984_v0 = vpop.f32.mrf.mxu1 }
 0x406   :  { %1855 = vpow2.f32 %v1670_v61  ;;  %v1671_v4 = vmul.f32 -1.442695, %v988_v59  ;;  %v1672_v52 = vmul.f32 -1.442695, %v990_v10  ;;  %v2543_v10 = vld [vmem:[#allocation8 + $0xc4] ss:$16 sps:$4 sm:$0xff]  }
 0x407   :  { %v944_v53 = vpop.f32.mrf.mxu0  ;;  %v985_v54 = vpop.f32.mrf.mxu1 }
 0x408   :  { %1857 = vpow2.f32 %v1671_v4  ;;  %v2537_v54 = vld [vmem:[#allocation8 + $0xe0] ss:$16 sps:$4 sm:$0xff]  }
 0x409   :  { %1859 = vtanh.f32 %v989_v11  ;;  %v2551_v11 = vld [vmem:[#allocation8 + $0xc0] ss:$16 sps:$4 sm:$0xff]  }
 0x40a   :  { %1861 = vpow2.f32 %v1672_v52  ;;  %v2554_v52 = vld [vmem:[#allocation8 + $0xc8] ss:$16 sps:$4 sm:$0xff]  }
 0x413   :  { %v1856_v38 = vpop.eup %1855 }
 0x414   :  { %v994_v2 = vadd.f32 1.0, %v1856_v38  ;;  %v2557_v38 = vld [vmem:[#allocation8 + $0xa4] ss:$16 sps:$4 sm:$0xff]  }
 0x415   :  { %v1858_v6 = vpop.eup %1857 }
 0x416   :  { %1863 = vrcp.f32 %v994_v2  ;;  %v1000_v1 = vadd.f32 1.0, %v1858_v6  ;;  %v1860_v58 = vpop.eup %1859  ;;  %v2560_v2 = vld [vmem:[#allocation8 + $0xac] ss:$16 sps:$4 sm:$0xff]   ;;  %v2563_v6 = vld [vmem:[#allocation8 + $0xa0] ss:$16 sps:$4 sm:$0xff]  }
 0x417   :  { %v1862_v56 = vpop.eup %1861 }
 0x418   :  { %1865 = vrcp.f32 %v1000_v1  ;;  %v1007_v46 = vadd.f32 1.0, %v1862_v56  ;;  %v2566_v1 = vld [vmem:[#allocation8 + $0xa8] ss:$16 sps:$4 sm:$0xff]   ;;  %v2572_v56 = vld [vmem:[#allocation8 + $0x8c] ss:$16 sps:$4 sm:$0xff]  }
 0x41a   :  { %1867 = vrcp.f32 %v1007_v46  ;;  %v2584_v46 = vld [vmem:[#allocation8 + $0x6c] ss:$16 sps:$4 sm:$0xff]  }
 0x423   :  { %v1864_v62 = vpop.eup %1863 }
 0x424   :  { %v1011_v47 = vmul.f32 %v1864_v62, %v1860_v58  ;;  %v2569_v58 = vld [vmem:[#allocation8 + $0x84] ss:$16 sps:$4 sm:$0xff]   ;;  %v2575_v62 = vld [vmem:[#allocation8 + $0x80] ss:$16 sps:$4 sm:$0xff]  }
 0x425   :  { %v1866_v29 = vpop.eup %1865 }
 0x426   :  { %v1010_v50 = vmul.f32 %v1866_v29, %v2446_v45  ;;  %v2581_v29 = vld [vmem:[#allocation8 + $0x64] ss:$16 sps:$4 sm:$0xff]  }
 0x427   :  { %v1868_v60 = vpop.eup %1867 }
 0x428   :  { %v2488_v5 = vadd.f32 %v1011_v47, %v1010_v50  ;;  %v2578_v47 = vld [vmem:[#allocation8 + $0x88] ss:$16 sps:$4 sm:$0xff]   ;;  %v2587_v50 = vld [vmem:[#allocation8 + $0x60] ss:$16 sps:$4 sm:$0xff]  }
 0x42a   :  { %1869 = vtanh.f32 %v2488_v5 }
 0x437   :  { %v1870_v9 = vpop.eup %1869 }
 0x438   :  { %v1014_v55 = vmul.f32 %v1870_v9, %v1868_v60  ;;  %v2593_v60 = vld [vmem:[#allocation8 + $0x44] ss:$16 sps:$4 sm:$0xff]   ;;  %v2596_v9 = vld [vmem:[#allocation8 + $0x4c] ss:$16 sps:$4 sm:$0xff]  }
 0x43a   :  { %v1019_v48 = vpack.c.bf16 %v1014_v55, %v1014_v55  ;;  %v2599_v55 = vld [vmem:[#allocation8 + $0x40] ss:$16 sps:$4 sm:$0xff]  }
 0x43c   :  { %1053 = vmatmul.mubr.bf16.vlgmr.msra.gmra.mxu0 %v1019_v48  ;;  %1094 = vmatmul.mubr.bf16.vlgmr.msra.gmra.mxu1 %v1019_v48  ;;  %v2602_v48 = vld [vmem:[#allocation8 + $0x48] ss:$16 sps:$4 sm:$0xff]  }
 0x43d   :  { %1136 = vmatpush1.bf16.msra.mxu0 %v2118_v12  ;;  %1177 = vmatpush1.bf16.msra.mxu1 %v2120_v13  ;;  %v2523_v12 = vld [vmem:[#allocation8 + $0xe4] ss:$16 sps:$4 sm:$0xff]   ;;  %v2526_v13 = vld [vmem:[#allocation8 + $0xec] ss:$16 sps:$4 sm:$0xff]  }
 0x43e   :  { %1137 = vmatprep.subr.bf16.mxu0 %v2123_v14  ;;  %1178 = vmatprep.subr.bf16.mxu1 %v2126_v15 }
 0x43f   :  { %1167 = vmatprep.mubr.bf16.mxu0 %v2712_v49  ;;  %1208 = vmatprep.mubr.bf16.mxu1 %v2712_v49 }
 0x441   :  { %1138 = vmatpush1.bf16.msra.mxu0 %v2130_v16  ;;  %1179 = vmatpush1.bf16.msra.mxu1 %v2134_v17  ;;  %v2718_v16 = vld [vmem:[#allocation20_spill] sm:$0xff] }
 0x442   :  { %1139 = vmatprep.subr.bf16.mxu0 %v2138_v18  ;;  %1180 = vmatprep.subr.bf16.mxu1 %v2145_v20 }
 0x445   :  { %1140 = vmatpush1.bf16.msra.mxu0 %v2147_v21  ;;  %1181 = vmatpush1.bf16.msra.mxu1 %v2151_v22  ;;  %v2719_v22 = vld [vmem:[#allocation22_spill] sm:$0xff] }
 0x446   :  { %1141 = vmatprep.subr.bf16.mxu0 %v2155_v23  ;;  %1182 = vmatprep.subr.bf16.mxu1 %v2157_v24 }
 0x449   :  { %1142 = vmatpush1.bf16.msra.mxu0 %v2161_v25  ;;  %1183 = vmatpush1.bf16.msra.mxu1 %v2165_v26 }
 0x44a   :  { %1143 = vmatprep.subr.bf16.mxu0 %v2169_v27  ;;  %1184 = vmatprep.subr.bf16.mxu1 %v2171_v28 }
 0x44d   :  { %1144 = vmatpush1.bf16.msra.mxu0 %v2178_v30  ;;  %1185 = vmatpush1.bf16.msra.mxu1 %v2180_v31  ;;  %v2720_v30 = vld [vmem:[#allocation23_spill] sm:$0xff] }
 0x44e   :  { %1145 = vmatprep.subr.bf16.mxu0 %v2184_v32  ;;  %1186 = vmatprep.subr.bf16.mxu1 %v2188_v33  ;;  %v2721_v32 = vld [vmem:[#allocation21_spill] sm:$0xff] }
 0x451   :  { %1146 = vmatpush1.bf16.msra.mxu0 %v2192_v34  ;;  %1187 = vmatpush1.bf16.msra.mxu1 %v2194_v35 }
 0x452   :  { %1147 = vmatprep.subr.bf16.mxu0 %v2198_v36  ;;  %1188 = vmatprep.subr.bf16.mxu1 %v2202_v37 }
 0x455   :  { %1148 = vmatpush1.bf16.msra.mxu0 %v2209_v39  ;;  %1189 = vmatpush1.bf16.msra.mxu1 %v2211_v40 }
 0x456   :  { %1149 = vmatprep.subr.bf16.mxu0 %v2213_v41  ;;  %1190 = vmatprep.subr.bf16.mxu1 %v2215_v42 }
 0x459   :  { %1150 = vmatpush1.bf16.msra.mxu0 %v2225_v43  ;;  %1191 = vmatpush1.bf16.msra.mxu1 %v2227_v44 }
 0x45a   :  { %1250 = vmatprep.subr.bf16.mxu0 %v2523_v12  ;;  %1291 = vmatprep.subr.bf16.mxu1 %v2526_v13 }
 0x4fc   :  { %v1054_v14 = vpop.f32.mrf.mxu0  ;;  %v1095_v15 = vpop.f32.mrf.mxu1 }
 0x4fd   :  { %v1102_v17 = vadd.f32 %v1054_v14, %v2718_v16  ;;  %v1104_v33 = vadd.f32 %v1095_v15, %v2721_v32  ;;  %v2605_v14 = vld [vmem:[#allocation8 + $0x24] ss:$16 sps:$4 sm:$0xff]   ;;  %v2608_v15 = vld [vmem:[#allocation8 + $0x2c] ss:$16 sps:$4 sm:$0xff]   ;;  %v2611_v16 = vld [vmem:[#allocation8 + $0x20] ss:$16 sps:$4 sm:$0xff]  }
 0x4fe   :  { %v1056_v18 = vpop.f32.mrf.mxu0  ;;  %v1097_v20 = vpop.f32.mrf.mxu1 }
 0x4ff   :  { %v1673_v21 = vmul.f32 -1.442695, %v1102_v17  ;;  %v1103_v23 = vadd.f32 %v1056_v18, %v2719_v22  ;;  %v1105_v31 = vadd.f32 %v1097_v20, %v2720_v30  ;;  %v2614_v17 = vld [vmem:[#allocation8 + $0x28] ss:$16 sps:$4 sm:$0xff]   ;;  %v2617_v18 = vld [vmem:[#allocation8 + $0x4] ss:$16 sps:$4 sm:$0xff]  }
 0x500   :  { %v1058_v24 = vpop.f32.mrf.mxu0  ;;  %v1099_v25 = vpop.f32.mrf.mxu1  ;;  %v2620_v20 = vld [vmem:[#allocation8 + $0xc] ss:$16 sps:$4 sm:$0xff]  }
 0x501   :  { %1871 = vpow2.f32 %v1673_v21  ;;  %v1674_v26 = vmul.f32 -1.442695, %v1103_v23  ;;  %v1675_v34 = vmul.f32 -1.442695, %v1105_v31  ;;  %v2722_v23 = vld [vmem:[#allocation24_spill] sm:$0xff] }
 0x502   :  { %v1059_v27 = vpop.f32.mrf.mxu0  ;;  %v1100_v28 = vpop.f32.mrf.mxu1 }
 0x503   :  { %1873 = vpow2.f32 %v1674_v26  ;;  %v2723_v28 = vld [vmem:[#allocation26_spill] sm:$0xff] }
 0x504   :  { %1875 = vtanh.f32 %v1104_v33 }
 0x505   :  { %1877 = vpow2.f32 %v1675_v34 }
 0x50e   :  { %v1872_v35 = vpop.eup %1871 }
 0x50f   :  { %v1109_v36 = vadd.f32 1.0, %v1872_v35  ;;  %v2725_v35 = vld [vmem:[#allocation25_spill] sm:$0xff] }
 0x510   :  { %v1874_v37 = vpop.eup %1873 }
 0x511   :  { %1879 = vrcp.f32 %v1109_v36  ;;  %v1115_v39 = vadd.f32 1.0, %v1874_v37  ;;  %v1876_v40 = vpop.eup %1875 }
 0x512   :  { %v1878_v41 = vpop.eup %1877 }
 0x513   :  { %1881 = vrcp.f32 %v1115_v39  ;;  %v1122_v61 = vadd.f32 1.0, %v1878_v41 }
 0x515   :  { %1883 = vrcp.f32 %v1122_v61 }
 0x51e   :  { %v1880_v42 = vpop.eup %1879 }
 0x51f   :  { %v1126_v45 = vmul.f32 %v1880_v42, %v1876_v40 }
 0x520   :  { %v1882_v3 = vpop.eup %1881 }
 0x521   :  { %v1125_v57 = vmul.f32 %v1882_v3, %v2488_v5  ;;  %v2590_v5 = vld [vmem:[#allocation8 + $0x68] ss:$16 sps:$4 sm:$0xff]  }
 0x522   :  { %v1884_v63 = vpop.eup %1883 }
 0x523   :  { %v2534_v59 = vadd.f32 %v1126_v45, %v1125_v57 }
 0x525   :  { %1885 = vtanh.f32 %v2534_v59 }
 0x532   :  { %v1886_v0 = vpop.eup %1885 }
 0x533   :  { %v1129_v4 = vmul.f32 %v1886_v0, %v1884_v63 }
 0x535   :  { %v1134_v53 = vpack.c.bf16 %v1129_v4, %v1129_v4 }
 0x537   :  { %1168 = vmatmul.mubr.bf16.vlgmr.msra.gmra.mxu0 %v1134_v53  ;;  %1209 = vmatmul.mubr.bf16.vlgmr.msra.gmra.mxu1 %v1134_v53 }
 0x538   :  { %1251 = vmatpush1.bf16.msra.mxu0 %v2537_v54  ;;  %1292 = vmatpush1.bf16.msra.mxu1 %v2540_v51 }
 0x539   :  { %1252 = vmatprep.subr.bf16.mxu0 %v2543_v10  ;;  %1293 = vmatprep.subr.bf16.mxu1 %v2546_v8 }
 0x53a   :  { %1282 = vmatprep.mubr.bf16.mxu0 %v2712_v49  ;;  %1323 = vmatprep.mubr.bf16.mxu1 %v2712_v49 }
 0x53c   :  { %1253 = vmatpush1.bf16.msra.mxu0 %v2551_v11  ;;  %1294 = vmatpush1.bf16.msra.mxu1 %v2554_v52 }
 0x53d   :  { %1254 = vmatprep.subr.bf16.mxu0 %v2557_v38  ;;  %1295 = vmatprep.subr.bf16.mxu1 %v2560_v2 }
 0x540   :  { %1255 = vmatpush1.bf16.msra.mxu0 %v2563_v6  ;;  %1296 = vmatpush1.bf16.msra.mxu1 %v2566_v1 }
 0x541   :  { %1256 = vmatprep.subr.bf16.mxu0 %v2569_v58  ;;  %1297 = vmatprep.subr.bf16.mxu1 %v2572_v56 }
 0x544   :  { %1257 = vmatpush1.bf16.msra.mxu0 %v2575_v62  ;;  %1298 = vmatpush1.bf16.msra.mxu1 %v2578_v47 }
 0x545   :  { %1258 = vmatprep.subr.bf16.mxu0 %v2581_v29  ;;  %1299 = vmatprep.subr.bf16.mxu1 %v2584_v46 }
 0x548   :  { %1259 = vmatpush1.bf16.msra.mxu0 %v2587_v50  ;;  %1300 = vmatpush1.bf16.msra.mxu1 %v2590_v5 }
 0x549   :  { %1260 = vmatprep.subr.bf16.mxu0 %v2593_v60  ;;  %1301 = vmatprep.subr.bf16.mxu1 %v2596_v9 }
 0x54c   :  { %1261 = vmatpush1.bf16.msra.mxu0 %v2599_v55  ;;  %1302 = vmatpush1.bf16.msra.mxu1 %v2602_v48 }
 0x54d   :  { %1262 = vmatprep.subr.bf16.mxu0 %v2605_v14  ;;  %1303 = vmatprep.subr.bf16.mxu1 %v2608_v15 }
 0x550   :  { %1263 = vmatpush1.bf16.msra.mxu0 %v2611_v16  ;;  %1304 = vmatpush1.bf16.msra.mxu1 %v2614_v17 }
 0x551   :  { %1264 = vmatprep.subr.bf16.mxu0 %v2617_v18  ;;  %1305 = vmatprep.subr.bf16.mxu1 %v2620_v20 }
 0x554   :  { %1265 = vmatpush1.bf16.msra.mxu0 %v2225_v43  ;;  %1306 = vmatpush1.bf16.msra.mxu1 %v2227_v44  ;;  %v2724_v44 = vld [vmem:[#allocation27_spill] sm:$0xff] }
 0x555   :  { %1365 = vmatprep.subr.bf16.mxu0 %v2523_v12  ;;  %1406 = vmatprep.subr.bf16.mxu1 %v2526_v13 }
 0x5f7   :  { %v1169_v21 = vpop.f32.mrf.mxu0  ;;  %v1210_v22 = vpop.f32.mrf.mxu1 }
 0x5f8   :  { %v1217_v24 = vadd.f32 %v1169_v21, %v2722_v23  ;;  %v1219_v13 = vadd.f32 %v1210_v22, %v2725_v35  ;;  %v1804_v35 = vld [vmem:[#allocation10 + $0x10] sm:$0xff]  }
 0x5f9   :  { %v1171_v25 = vpop.f32.mrf.mxu0  ;;  %v1212_v26 = vpop.f32.mrf.mxu1 }
 0x5fa   :  { %v1676_v27 = vmul.f32 -1.442695, %v1217_v24  ;;  %v1218_v30 = vadd.f32 %v1171_v25, %v2723_v28  ;;  %v1220_v12 = vadd.f32 %v1212_v26, %v2724_v44  ;;  %v1802_v44 = vld [vmem:[#allocation10 + $0x20] sm:$0xff]  }
 0x5fb   :  { %v1173_v31 = vpop.f32.mrf.mxu0  ;;  %v1214_v32 = vpop.f32.mrf.mxu1 }
 0x5fc   :  { %1887 = vpow2.f32 %v1676_v27  ;;  %v1677_v33 = vmul.f32 -1.442695, %v1218_v30  ;;  %v1678_v36 = vmul.f32 -1.442695, %v1220_v12  ;;  %v1799_v32 = vld [vmem:[#allocation10 + $0x38] sm:$0xff]  }
 0x5fd   :  { %v1174_v43 = vpop.f32.mrf.mxu0  ;;  %v1215_v34 = vpop.f32.mrf.mxu1  ;;  %v1803_v12 = vld [vmem:[#allocation10 + $0x18] sm:$0xff]  }
 0x5fe   :  { %1889 = vpow2.f32 %v1677_v33  ;;  %v2062_v33 = vmov 0.0   ;;  %v1800_v43 = vld [vmem:[#allocation10 + $0x30] sm:$0xff]   ;;  %v1801_v34 = vld [vmem:[#allocation10 + $0x28] sm:$0xff]  }
 0x5ff   :  { %1891 = vtanh.f32 %v1219_v13  ;;  %v1805_v13 = vld [vmem:[#allocation10 + $0x8] sm:$0xff]  }
 0x600   :  { %1893 = vpow2.f32 %v1678_v36  ;;  %v1806_v36 = vld [vmem:[#allocation10] sm:$0xff]  }
 0x609   :  { %v1888_v37 = vpop.eup %1887 }
 0x60a   :  { %v1224_v39 = vadd.f32 1.0, %v1888_v37 }
 0x60b   :  { %v1890_v40 = vpop.eup %1889 }
 0x60c   :  { %1895 = vrcp.f32 %v1224_v39  ;;  %v1230_v41 = vadd.f32 1.0, %v1890_v40  ;;  %v1892_v42 = vpop.eup %1891  ;;  %v2730_v40 = vld [vmem:[#allocation32_spill] sm:$0xff] }
 0x60d   :  { %v1894_v45 = vpop.eup %1893 }
 0x60e   :  { %1897 = vrcp.f32 %v1230_v41  ;;  %v1237_v63 = vadd.f32 1.0, %v1894_v45 }
 0x610   :  { %1899 = vrcp.f32 %v1237_v63 }
 0x619   :  { %v1896_v3 = vpop.eup %1895 }
 0x61a   :  { %v1241_v61 = vmul.f32 %v1896_v3, %v1892_v42 }
 0x61b   :  { %v1898_v57 = vpop.eup %1897 }
 0x61c   :  { %v1240_v0 = vmul.f32 %v1898_v57, %v2534_v59  ;;  %v1966_v59 = vld [vmem:[#allocation8 + $0x8] ss:$16 sps:$4 sm:$0xff]  }
 0x61d   :  { %v1900_v53 = vpop.eup %1899 }
 0x61e   :  { %v2632_v4 = vadd.f32 %v1241_v61, %v1240_v0 }
 0x620   :  { %1901 = vtanh.f32 %v2632_v4 }
 0x62d   :  { %v1902_v21 = vpop.eup %1901 }
 0x62e   :  { %v1244_v22 = vmul.f32 %v1902_v21, %v1900_v53 }
 0x630   :  { %v1249_v23 = vpack.c.bf16 %v1244_v22, %v1244_v22  ;;  %v2731_v22 = vld [vmem:[#allocation33_spill] sm:$0xff] }
 0x632   :  { %1283 = vmatmul.mubr.bf16.vlgmr.msra.gmra.mxu0 %v1249_v23  ;;  %1324 = vmatmul.mubr.bf16.vlgmr.msra.gmra.mxu1 %v1249_v23 }
 0x633   :  { %1366 = vmatpush1.bf16.msra.mxu0 %v2537_v54  ;;  %1407 = vmatpush1.bf16.msra.mxu1 %v2540_v51 }
 0x634   :  { %1367 = vmatprep.subr.bf16.mxu0 %v2543_v10  ;;  %1408 = vmatprep.subr.bf16.mxu1 %v2546_v8  ;;  %v2726_v10 = vld [vmem:[#allocation28_spill] sm:$0xff] }
 0x635   :  { %1397 = vmatprep.mubr.bf16.mxu0 %v2712_v49  ;;  %1438 = vmatprep.mubr.bf16.mxu1 %v2712_v49  ;;  %v1965_v49 = vld [vmem:[#allocation8] ss:$16 sps:$4 sm:$0xff]  }
 0x637   :  { %1368 = vmatpush1.bf16.msra.mxu0 %v2551_v11  ;;  %1409 = vmatpush1.bf16.msra.mxu1 %v2554_v52 }
 0x638   :  { %1369 = vmatprep.subr.bf16.mxu0 %v2557_v38  ;;  %1410 = vmatprep.subr.bf16.mxu1 %v2560_v2  ;;  %v2727_v2 = vld [vmem:[#allocation30_spill] sm:$0xff] }
 0x63b   :  { %1370 = vmatpush1.bf16.msra.mxu0 %v2563_v6  ;;  %1411 = vmatpush1.bf16.msra.mxu1 %v2566_v1 }
 0x63c   :  { %1371 = vmatprep.subr.bf16.mxu0 %v2569_v58  ;;  %1412 = vmatprep.subr.bf16.mxu1 %v2572_v56 }
 0x63f   :  { %1372 = vmatpush1.bf16.msra.mxu0 %v2575_v62  ;;  %1413 = vmatpush1.bf16.msra.mxu1 %v2578_v47 }
 0x640   :  { %1373 = vmatprep.subr.bf16.mxu0 %v2581_v29  ;;  %1414 = vmatprep.subr.bf16.mxu1 %v2584_v46  ;;  %v2728_v29 = vld [vmem:[#allocation31_spill] sm:$0xff] }
 0x643   :  { %1374 = vmatpush1.bf16.msra.mxu0 %v2587_v50  ;;  %1415 = vmatpush1.bf16.msra.mxu1 %v2590_v5  ;;  %v2729_v50 = vld [vmem:[#allocation29_spill] sm:$0xff] }
 0x644   :  { %1375 = vmatprep.subr.bf16.mxu0 %v2593_v60  ;;  %1416 = vmatprep.subr.bf16.mxu1 %v2596_v9 }
 0x647   :  { %1376 = vmatpush1.bf16.msra.mxu0 %v2599_v55  ;;  %1417 = vmatpush1.bf16.msra.mxu1 %v2602_v48 }
 0x648   :  { %1377 = vmatprep.subr.bf16.mxu0 %v2605_v14  ;;  %1418 = vmatprep.subr.bf16.mxu1 %v2608_v15 }
 0x64b   :  { %1378 = vmatpush1.bf16.msra.mxu0 %v2611_v16  ;;  %1419 = vmatpush1.bf16.msra.mxu1 %v2614_v17 }
 0x64c   :  { %1379 = vmatprep.subr.bf16.mxu0 %v2617_v18  ;;  %1420 = vmatprep.subr.bf16.mxu1 %v2620_v20 }
 0x64f   :  { %1380 = vmatpush1.bf16.msra.mxu0 %v1965_v49  ;;  %1421 = vmatpush1.bf16.msra.mxu1 %v1966_v59 }
 0x650   :  { %1703 = vmatprep.subr.bf16.mxu0 %v2062_v33 }
 0x6f2   :  { %v1284_v54 = vpop.f32.mrf.mxu0  ;;  %v1325_v51 = vpop.f32.mrf.mxu1 }
 0x6f3   :  { %v1332_v8 = vadd.f32 %v1284_v54, %v2726_v10  ;;  %v1334_v5 = vadd.f32 %v1325_v51, %v2729_v50 }
 0x6f4   :  { %v1286_v11 = vpop.f32.mrf.mxu0  ;;  %v1327_v52 = vpop.f32.mrf.mxu1 }
 0x6f5   :  { %v1679_v38 = vmul.f32 -1.442695, %v1332_v8  ;;  %v1333_v6 = vadd.f32 %v1286_v11, %v2727_v2  ;;  %v1335_v46 = vadd.f32 %v1327_v52, %v2728_v29 }
 0x6f6   :  { %v1288_v1 = vpop.f32.mrf.mxu0  ;;  %v1329_v58 = vpop.f32.mrf.mxu1 }
 0x6f7   :  { %1903 = vpow2.f32 %v1679_v38  ;;  %v1680_v56 = vmul.f32 -1.442695, %v1333_v6  ;;  %v1681_v60 = vmul.f32 -1.442695, %v1335_v46 }
 0x6f8   :  { %v1289_v62 = vpop.f32.mrf.mxu0  ;;  %v1330_v47 = vpop.f32.mrf.mxu1 }
 0x6f9   :  { %1905 = vpow2.f32 %v1680_v56  ;;  %v1685_v47 = vld [vmem:[%s2689_s5] ss:$0 sm:$0xff] }
 0x6fa   :  { %1907 = vtanh.f32 %v1334_v5 }
 0x6fb   :  { %1909 = vpow2.f32 %v1681_v60 }
 0x704   :  { %v1904_v9 = vpop.eup %1903 }
 0x705   :  { %v1339_v55 = vadd.f32 1.0, %v1904_v9 }
 0x706   :  { %v1906_v48 = vpop.eup %1905 }
 0x707   :  { %1911 = vrcp.f32 %v1339_v55  ;;  %v1345_v14 = vadd.f32 1.0, %v1906_v48  ;;  %v1908_v15 = vpop.eup %1907 }
 0x708   :  { %v1910_v16 = vpop.eup %1909 }
 0x709   :  { %1913 = vrcp.f32 %v1345_v14  ;;  %v1352_v24 = vadd.f32 1.0, %v1910_v16 }
 0x70b   :  { %1915 = vrcp.f32 %v1352_v24 }
 0x714   :  { %v1912_v17 = vpop.eup %1911 }
 0x715   :  { %v1356_v18 = vmul.f32 %v1912_v17, %v1908_v15 }
 0x716   :  { %v1914_v20 = vpop.eup %1913 }
 0x717   :  { %v1355_v25 = vmul.f32 %v1914_v20, %v2632_v4 }
 0x718   :  { %v1916_v27 = vpop.eup %1915 }
 0x719   :  { %v2670_v26 = vadd.f32 %v1356_v18, %v1355_v25 }
 0x71b   :  { %1917 = vtanh.f32 %v2670_v26 }
 0x728   :  { %v1918_v28 = vpop.eup %1917 }
 0x729   :  { %v1359_v30 = vmul.f32 %v1918_v28, %v1916_v27 }
 0x72b   :  { %v1364_v31 = vpack.c.bf16 %v1359_v30, %v1359_v30 }
 0x72d   :  { %1398 = vmatmul.mubr.bf16.vlgmr.msra.gmra.mxu0 %v1364_v31  ;;  %1439 = vmatmul.mubr.bf16.vlgmr.msra.gmra.mxu1 %v1364_v31 }
 0x72e   :  { %1704 = vmatpush3.bf16.msra.mxu0 %v1799_v32  ;;  %1719 = vmatprep.mubr.msk.bf16.mxu0 %vm2063_vm1, %v2062_v33 }
 0x72f   :  { %1705 = vmatprep.subr.bf16.mxu0 %v2062_v33 }
 0x732   :  { %1706 = vmatpush3.bf16.msra.mxu0 %v1800_v43 }
 0x733   :  { %1707 = vmatprep.subr.bf16.mxu0 %v2062_v33 }
 0x736   :  { %1708 = vmatpush3.bf16.msra.mxu0 %v1801_v34 }
 0x737   :  { %1709 = vmatprep.subr.bf16.mxu0 %v2062_v33 }
 0x73a   :  { %1710 = vmatpush3.bf16.msra.mxu0 %v1802_v44 }
 0x73b   :  { %1711 = vmatprep.subr.bf16.mxu0 %v2062_v33 }
 0x73e   :  { %1712 = vmatpush3.bf16.msra.mxu0 %v1803_v12 }
 0x73f   :  { %1713 = vmatprep.subr.bf16.mxu0 %v2062_v33 }
 0x742   :  { %1714 = vmatpush3.bf16.msra.mxu0 %v1804_v35 }
 0x743   :  { %1715 = vmatprep.subr.bf16.mxu0 %v2062_v33 }
 0x746   :  { %1716 = vmatpush3.bf16.msra.mxu0 %v1805_v13 }
 0x747   :  { %1717 = vmatprep.subr.bf16.mxu0 %v2062_v33 }
 0x74a   :  { %1718 = vmatpush3.bf16.msra.mxu0 %v1806_v36 }
 0x7ed   :  { %v1399_v37 = vpop.f32.mrf.mxu0  ;;  %v1440_v39 = vpop.f32.mrf.mxu1 }
 0x7ee   :  { %v1447_v41 = vadd.f32 %v1399_v37, %v2730_v40  ;;  %v1449_v23 = vadd.f32 %v1440_v39, %v2731_v22 }
 0x7ef   :  { %v1401_v42 = vpop.f32.mrf.mxu0  ;;  %v1442_v45 = vpop.f32.mrf.mxu1 }
 0x7f0   :  { %v1682_v3 = vmul.f32 -1.442695, %v1447_v41  ;;  %v1448_v61 = vadd.f32 %v1401_v42, %v2352_v7  ;;  %v1450_v21 = vadd.f32 %v1442_v45, %v2355_v19 }
 0x7f1   :  { %v1403_v57 = vpop.f32.mrf.mxu0  ;;  %v1444_v63 = vpop.f32.mrf.mxu1 }
 0x7f2   :  { %1919 = vpow2.f32 %v1682_v3  ;;  %v1683_v0 = vmul.f32 -1.442695, %v1448_v61  ;;  %v1684_v49 = vmul.f32 -1.442695, %v1450_v21 }
 0x7f3   :  { %v1404_v4 = vpop.f32.mrf.mxu0  ;;  %v1445_v53 = vpop.f32.mrf.mxu1 }
 0x7f4   :  { %1921 = vpow2.f32 %v1683_v0 }
 0x7f5   :  { %1923 = vtanh.f32 %v1449_v23 }
 0x7f6   :  { %1925 = vpow2.f32 %v1684_v49 }
 0x7ff   :  { %v1920_v59 = vpop.eup %1919 }
 0x800   :  { %v1454_v54 = vadd.f32 1.0, %v1920_v59 }
 0x801   :  { %v1922_v51 = vpop.eup %1921 }
 0x802   :  { %1927 = vrcp.f32 %v1454_v54  ;;  %v1460_v10 = vadd.f32 1.0, %v1922_v51  ;;  %v1924_v7 = vpop.eup %1923 }
 0x803   :  { %v1926_v8 = vpop.eup %1925 }
 0x804   :  { %1929 = vrcp.f32 %v1460_v10  ;;  %v1467_v2 = vadd.f32 1.0, %v1926_v8 }
 0x806   :  { %1931 = vrcp.f32 %v1467_v2 }
 0x80f   :  { %v1928_v11 = vpop.eup %1927 }
 0x810   :  { %v1471_v52 = vmul.f32 %v1928_v11, %v1924_v7 }
 0x811   :  { %v1930_v38 = vpop.eup %1929 }
 0x812   :  { %v1470_v6 = vmul.f32 %v1930_v38, %v2670_v26 }
 0x813   :  { %v1932_v1 = vpop.eup %1931 }
 0x814   :  { %v1472_v19 = vadd.f32 %v1471_v52, %v1470_v6 }
 0x816   :  { %1933 = vtanh.f32 %v1472_v19 }
 0x823   :  { %v1934_v58 = vpop.eup %1933 }
 0x824   :  { %v1474_v56 = vmul.f32 %v1934_v58, %v1932_v1 }
 0x826   :  { %v1480_v62 = vpack.c.bf16 %v1474_v56, %v1474_v56 }
 0x828   :  { %1720 = vmatmul.mubr.bf16.vlgmr.msra.gmra.mxu0 %v1480_v62 }
 0x8e8   :  { %v1586_v29 = vpop.f32.mrf.mxu0 }
 0x8e9   :  { %v1587_v46 = vadd.f32 %v1685_v47, %v1586_v29 }
 0x8ea   :  { %v1721_v50 = vpop.f32.mrf.mxu0 }
 0x8eb   :  { %1592 = vst [vmem:[#allocation11] sm:$0xff] %v1587_v46 }
 0x8ec   :  { %v1589_v5 = vpop.f32.mrf.mxu0 }
 0x8ed   :  { %2038 = shalt.err (!%p2035_p5)
}
 0x8ee   :  { %1602 = dma.vmem_to_hbm [thread:$0]  %s1600_s24, 128, %s2690_s6, [#allocation7]   ;;  %v1722_v60 = vpop.f32.mrf.mxu0 }
 0x8ef   :  { %2051 = dma.done.wait [#allocation7], 128  }
 0x8f0   :  { %2052 = vsyncadd [#allocation7], 4294967168 }
 0x8f1   :  { %1606 = vsyncpa [#allocation6], 1 }
 0x8f2   :  { %1607 = vsyncpa [#allocation9], 1 }
 0x8f3   :  { %1608 = vsyncpa [#allocation7], 1 }

</bundles_post_ra>
